<compile_context>
chip_gen: v5e
topology: v5e:2x2
jax: 0.10.0
libtpu: 0.0.40
codegen_flags: <defaults>
</compile_context>

<pallas_src>
import functools

import jax
import jax.numpy as jnp
import numpy as np
from jax.experimental import pallas as pl
from jax.experimental.pallas import tpu as pltpu


def _round_up(x, m):
    return (x + m - 1) // m * m


def _pick_chunk(S, target):
    """Largest divisor of S that is <= target (time-chunk length)."""
    t = max(1, min(int(target), S))
    while S % t:
        t -= 1
    return t


# ----------------------------------------------------------------------------
# Pallas kernel: time-chunked fused bidirectional GRU
# ----------------------------------------------------------------------------
def bigru_kernel(xf_ref, xb_ref, wif_ref, wib_ref, whf_ref, whb_ref,
                 bh_ref, bin_ref, out_ref, hn_ref,
                 gxf_ref, gxb_ref, h_ref, *, Tc, Bp, Hp):
    """One grid step = one chunk of Tc timesteps (both directions in lockstep).

    xf_ref : (Tc*Bp, Ep) bf16  forward-ordered x rows for this chunk.
    xb_ref : (Tc*Bp, Ep) bf16  mirror chunk (times S-(c+1)*Tc .. S-c*Tc-1).
    wif/wib: (Ep, 3Hp)   bf16  dense input weights, cols [r | z | n] per dir.
    whf/whb: (Hp, 3Hp)   bf16  dense recurrent weights per direction.
    bh_ref : (1, 6Hp)    f32   [fwd r,z,n | bwd r,z,n]; r/z slots hold b_i+b_h,
                               n slot holds b_hn only.
    bin_ref: (1, 2Hp)    f32   [b_in_fwd | b_in_bwd]  (added outside r*(...)).
    out_ref: (Tc, Bp, 2Hp) f32 row j = [fwd h_{t} | bwd h at processing step t].
    hn_ref : (2, Bp, Hp)   f32 final [h_fwd; h_bwd], written on last chunk.
    gxf/gxb: (Tc*Bp, 3Hp) bf16 VMEM scratch, per-chunk input projections.
    h_ref  : (2, Bp, Hp)   f32 VMEM scratch, hidden state carried across chunks.
    """
    c = pl.program_id(0)
    nc = pl.num_programs(0)

    @pl.when(c == 0)
    def _init():
        h_ref[...] = jnp.zeros_like(h_ref)

    # -- Phase 1: dense input projections for this chunk (pure matmul->store) -
    gxf_ref[...] = jnp.dot(xf_ref[...], wif_ref[...],
                           preferred_element_type=jnp.float32
                           ).astype(gxf_ref.dtype)
    gxb_ref[...] = jnp.dot(xb_ref[...], wib_ref[...],
                           preferred_element_type=jnp.float32
                           ).astype(gxb_ref.dtype)

    whf = whf_ref[...]
    whb = whb_ref[...]
    # Hoisted broadcasts (broadcast_in_dim is not CSE'd inside the loop).
    bhf = jnp.broadcast_to(bh_ref[:, 0:3 * Hp], (Bp, 3 * Hp))
    bhb = jnp.broadcast_to(bh_ref[:, 3 * Hp:6 * Hp], (Bp, 3 * Hp))
    binf = jnp.broadcast_to(bin_ref[:, 0:Hp], (Bp, Hp))
    binb = jnp.broadcast_to(bin_ref[:, Hp:2 * Hp], (Bp, Hp))

    # -- Phase 2: serial recurrence over the chunk (fwd and bwd interleaved) --
    def step(j, carry):
        hf, hb = carry                                      # (Bp, Hp) f32 each
        row_f = pl.multiple_of(j * Bp, Bp)
        row_b = pl.multiple_of((Tc - 1 - j) * Bp, Bp)       # mirror row
        gxf = gxf_ref[pl.ds(row_f, Bp), :].astype(jnp.float32)   # (Bp, 3Hp)
        gxb = gxb_ref[pl.ds(row_b, Bp), :].astype(jnp.float32)

        ghf = jnp.dot(hf.astype(whf.dtype), whf,
                      preferred_element_type=jnp.float32) + bhf
        ghb = jnp.dot(hb.astype(whb.dtype), whb,
                      preferred_element_type=jnp.float32) + bhb

        # PyTorch GRU gates (r, z, n) per direction.
        rf = jax.nn.sigmoid(gxf[:, 0:Hp] + ghf[:, 0:Hp])
        zf = jax.nn.sigmoid(gxf[:, Hp:2 * Hp] + ghf[:, Hp:2 * Hp])
        nf = jnp.tanh(gxf[:, 2 * Hp:3 * Hp] + binf + rf * ghf[:, 2 * Hp:3 * Hp])
        rb = jax.nn.sigmoid(gxb[:, 0:Hp] + ghb[:, 0:Hp])
        zb = jax.nn.sigmoid(gxb[:, Hp:2 * Hp] + ghb[:, Hp:2 * Hp])
        nb = jnp.tanh(gxb[:, 2 * Hp:3 * Hp] + binb + rb * ghb[:, 2 * Hp:3 * Hp])

        hf_new = (1.0 - zf) * nf + zf * hf
        hb_new = (1.0 - zb) * nb + zb * hb
        # Lane-dense (Bp, 2Hp >= 128) store; the concat is off the recurrence
        # critical path (only feeds the store).
        out_ref[j] = jnp.concatenate([hf_new, hb_new], axis=-1)
        return hf_new, hb_new

    hf_last, hb_last = jax.lax.fori_loop(
        0, Tc, step, (h_ref[0], h_ref[1]), unroll=min(4, Tc))

    h_ref[0] = hf_last
    h_ref[1] = hb_last

    @pl.when(c == nc - 1)
    def _finalize():
        hn_ref[0] = hf_last
        hn_ref[1] = hb_last


def bigru_pallas(x, wif, wib, whf, whb, bh6, bin2, *, S, Tc, Bp, Hp):
    nC = S // Tc
    Ep = x.shape[-1]
    kernel = functools.partial(bigru_kernel, Tc=Tc, Bp=Bp, Hp=Hp)

    def resident(a):
        nd = a.ndim
        return pl.BlockSpec(a.shape, lambda c: (0,) * nd)

    grid_spec = pltpu.PrefetchScalarGridSpec(
        num_scalar_prefetch=0,
        grid=(nC,),
        in_specs=[
            # forward-ordered chunk c and mirror chunk nC-1-c of the same x.
            pl.BlockSpec((None, Tc * Bp, Ep), lambda c: (c, 0, 0)),
            pl.BlockSpec((None, Tc * Bp, Ep), lambda c: (nC - 1 - c, 0, 0)),
            resident(wif), resident(wib), resident(whf), resident(whb),
            resident(bh6), resident(bin2),
        ],
        out_specs=[
            pl.BlockSpec((Tc, Bp, 2 * Hp), lambda c: (c, 0, 0)),
            pl.BlockSpec((2, Bp, Hp), lambda c: (0, 0, 0)),
        ],
        scratch_shapes=[
            pltpu.VMEM((Tc * Bp, 3 * Hp), jnp.bfloat16),   # gx forward
            pltpu.VMEM((Tc * Bp, 3 * Hp), jnp.bfloat16),   # gx backward
            pltpu.VMEM((2, Bp, Hp), jnp.float32),          # carried hidden
        ],
    )

    # Explicit VMEM budget: double-buffered x / out blocks + resident weights
    # + scratch, with headroom.  Stays well below physical VMEM (64 MiB v7x).
    vmem_bytes = (
        2 * 2 * Tc * Bp * Ep * 2                       # two x streams, 2 bufs
        + 2 * Ep * 3 * Hp * 2 + 2 * Hp * 3 * Hp * 2    # wi_f/b, wh_f/b
        + 8 * Hp * 4                                   # biases
        + 2 * Tc * Bp * 2 * Hp * 4                     # out block, 2 bufs
        + 2 * Bp * Hp * 4                              # h_n block
        + 2 * Tc * Bp * 3 * Hp * 2                     # gx scratches (bf16)
        + 2 * Bp * Hp * 4                              # h carry
    )
    vmem_limit = min(128 << 20, max(2 * vmem_bytes + (4 << 20), 32 << 20))

    return pl.pallas_call(
        kernel,
        grid_spec=grid_spec,
        out_shape=(
            jax.ShapeDtypeStruct((S, Bp, 2 * Hp), jnp.float32),
            jax.ShapeDtypeStruct((2, Bp, Hp), jnp.float32),
        ),
        compiler_params=pltpu.CompilerParams(
            dimension_semantics=("arbitrary",),
            vmem_limit_bytes=vmem_limit,
        ),
    )(x, x, wif, wib, whf, whb, bh6, bin2)


# ----------------------------------------------------------------------------
# Weight packing: PyTorch (3H,E)/(3H,H)/(3H,) -> dense padded kernel layout
# ----------------------------------------------------------------------------
def pack_bigru_params(p, *, H, Hp, E, Ep):
    def pack_wi(w):                    # (3H, E) -> (Ep, 3Hp), cols [r|z|n]
        out = jnp.zeros((Ep, 3 * Hp), jnp.float32)
        for g in range(3):
            out = out.at[0:E, g * Hp:g * Hp + H].set(w[g * H:(g + 1) * H, :].T)
        return out.astype(jnp.bfloat16)

    def pack_wh(w):                    # (3H, H) -> (Hp, 3Hp)
        out = jnp.zeros((Hp, 3 * Hp), jnp.float32)
        for g in range(3):
            out = out.at[0:H, g * Hp:g * Hp + H].set(w[g * H:(g + 1) * H, :].T)
        return out.astype(jnp.bfloat16)

    def pack_b(b):                     # (3H,) -> (1, 3Hp)
        out = jnp.zeros((1, 3 * Hp), jnp.float32)
        for g in range(3):
            out = out.at[0, g * Hp:g * Hp + H].set(b[g * H:(g + 1) * H])
        return out

    wif, wib = pack_wi(p["wi_f"]), pack_wi(p["wi_b"])
    whf, whb = pack_wh(p["wh_f"]), pack_wh(p["wh_b"])
    bif, bib = pack_b(p["bi_f"]), pack_b(p["bi_b"])
    bhf, bhb = pack_b(p["bh_f"]), pack_b(p["bh_b"])
    # Fold b_ir/b_iz into the recurrent-side bias (valid: sigmoid(gx+bi+gh+bh)
    # == sigmoid(gx+(gh+bi+bh))).  b_in must stay outside r*(...) -> bin2.
    fold = jnp.concatenate(
        [jnp.ones((1, 2 * Hp), jnp.float32), jnp.zeros((1, Hp), jnp.float32)],
        axis=1)
    bh6 = jnp.concatenate([bhf + fold * bif, bhb + fold * bib], axis=1)
    bin2 = jnp.concatenate([bif[:, 2 * Hp:3 * Hp], bib[:, 2 * Hp:3 * Hp]], axis=1)
    return wif, wib, whf, whb, bh6, bin2


# ----------------------------------------------------------------------------
# Encoder wrapper (embedding gather + layout fix-ups are XLA glue)
# ----------------------------------------------------------------------------
@functools.partial(jax.jit, static_argnames=("time_chunk",))
def encoder_forward(tokens, params, time_chunk=4):
    B, S = tokens.shape
    E = params["embedding"].shape[1]
    H = params["wh_f"].shape[1]

    Bp = _round_up(B, 16)        # bf16 sublane tile -> no per-step h relayout
    Hp = _round_up(H, 64)        # 2*Hp multiple of 128 -> lane-dense out store
    Ep = _round_up(E, 128)       # lane padding for the input projection
    Tc = _pick_chunk(S, time_chunk)
    nC = S // Tc

    # TODO(synk): nn.Embedding gather stays as jnp.take in the XLA wrapper.
    emb = jnp.take(params["embedding"], tokens, axis=0)          # (B, S, E)
    x_tm = jnp.transpose(emb, (1, 0, 2)).astype(jnp.float32)     # (S, B, E)
    x = jnp.zeros((S, Bp, Ep), jnp.float32).at[:, :B, :E].set(x_tm)
    x = x.astype(jnp.bfloat16).reshape(nC, Tc * Bp, Ep)          # single copy

    wif, wib, whf, whb, bh6, bin2 = pack_bigru_params(
        params, H=H, Hp=Hp, E=E, Ep=Ep)

    out_slab, hn = bigru_pallas(x, wif, wib, whf, whb, bh6, bin2,
                                S=S, Tc=Tc, Bp=Bp, Hp=Hp)

    # out_slab[t, :, :Hp] = fwd hidden at time t
    # out_slab[t, :, Hp:] = bwd hidden for original time S-1-t (processing order)
    out_f = out_slab[:, :B, :H]                                  # (S, B, H)
    out_b = out_slab[::-1, :B, Hp:Hp + H]                        # (S, B, H)
    outputs = jnp.transpose(jnp.concatenate([out_f, out_b], -1), (1, 0, 2))
    h_n = hn[:, :B, :H]                                          # (2, B, H)
    return outputs, h_n                                          # (B,S,2H), (2,B,H)


# ----------------------------------------------------------------------------
# Pure-JAX f32 reference for the sanity check
# ----------------------------------------------------------------------------
def gru_ref_dir(x_tm, wi, wh, bi, bh):
    H = wh.shape[1]
    hi = jax.lax.Precision.HIGHEST

    def step(h, xt):
        gx = jnp.dot(xt, wi.T, precision=hi) + bi
        gh = jnp.dot(h, wh.T, precision=hi) + bh
        r = jax.nn.sigmoid(gx[:, :H] + gh[:, :H])
        z = jax.nn.sigmoid(gx[:, H:2 * H] + gh[:, H:2 * H])
        n = jnp.tanh(gx[:, 2 * H:] + r * gh[:, 2 * H:])
        h_new = (1.0 - z) * n + z * h
        return h_new, h_new

    h0 = jnp.zeros((x_tm.shape[1], H), jnp.float32)
    hT, ys = jax.lax.scan(step, h0, x_tm)
    return ys, hT


def encoder_ref(tokens, params):
    emb = jnp.take(params["embedding"], tokens, axis=0)
    x_tm = jnp.transpose(emb, (1, 0, 2)).astype(jnp.float32)
    yf, hf = gru_ref_dir(x_tm, params["wi_f"], params["wh_f"],
                         params["bi_f"], params["bh_f"])
    yb_rev, hb = gru_ref_dir(x_tm[::-1], params["wi_b"], params["wh_b"],
                             params["bi_b"], params["bh_b"])
    yb = yb_rev[::-1]
    outputs = jnp.transpose(jnp.concatenate([yf, yb], axis=-1), (1, 0, 2))
    h_n = jnp.stack([hf, hb], axis=0)
    return outputs, h_n


# ----------------------------------------------------------------------------
# Deterministic parameter init (PyTorch-style shapes, synthetic values)
# ----------------------------------------------------------------------------
def make_params(key, input_size, hidden_size, embedding_size):
    H, E = hidden_size, embedding_size
    k = 1.0 / np.sqrt(H)
    keys = jax.random.split(key, 9)
    u = lambda kk, shape: jax.random.uniform(kk, shape, jnp.float32, -k, k)
    return {
        "embedding": jax.random.normal(keys[0], (input_size, E), jnp.float32),
        # PyTorch shapes: weight_ih (3H, E), weight_hh (3H, H), biases (3H,)
        "wi_f": u(keys[1], (3 * H, E)), "wh_f": u(keys[2], (3 * H, H)),
        "bi_f": u(keys[3], (3 * H,)),   "bh_f": u(keys[4], (3 * H,)),
        "wi_b": u(keys[5], (3 * H, E)), "wh_b": u(keys[6], (3 * H, H)),
        "bi_b": u(keys[7], (3 * H,)),   "bh_b": u(keys[8], (3 * H,)),
    }


if __name__ == "__main__":
    input_size = 50      # vocab size
    hidden_size = 32
    embedding_size = 32
    B, S = 4, 8

    key = jax.random.PRNGKey(0)
    pkey, tkey = jax.random.split(key)
    params = make_params(pkey, input_size, hidden_size, embedding_size)
    tokens = jax.random.randint(tkey, (B, S), 0, input_size, dtype=jnp.int32)

    # time_chunk=4 -> grid of 2 chunks: exercises the pipelined-chunk path and
    # the cross-chunk hidden-state carry.
    outputs, h_n = encoder_forward(tokens, params, time_chunk=4)
    jax.block_until_ready((outputs, h_n))

    assert outputs.shape == (B, S, 2 * hidden_size)
    assert h_n.shape == (2, B, hidden_size)

    # Tolerance covers bf16 x / weights / gx-scratch storage; gate math and
    # matmul accumulation stay f32.
    ref_out, ref_hn = encoder_ref(tokens, params)
    np.testing.assert_allclose(np.asarray(outputs), np.asarray(ref_out),
                               rtol=0, atol=3e-2)
    np.testing.assert_allclose(np.asarray(h_n), np.asarray(ref_hn),
                               rtol=0, atol=3e-2)

    print("KERNEL_OK")
</pallas_src>

<mosaic_0001>
module attributes {stable_mosaic.version = 11 : i64} {
  func.func @bigru_kernel(%arg0: i32, %arg1: memref<1x64x128xbf16, #tpu.memory_space<vmem>>, %arg2: memref<1x64x128xbf16, #tpu.memory_space<vmem>>, %arg3: memref<128x192xbf16, #tpu.memory_space<vmem>>, %arg4: memref<128x192xbf16, #tpu.memory_space<vmem>>, %arg5: memref<64x192xbf16, #tpu.memory_space<vmem>>, %arg6: memref<64x192xbf16, #tpu.memory_space<vmem>>, %arg7: memref<1x384xf32, #tpu.memory_space<vmem>>, %arg8: memref<1x128xf32, #tpu.memory_space<vmem>>, %arg9: memref<4x16x128xf32, #tpu.memory_space<vmem>>, %arg10: memref<2x16x64xf32, #tpu.memory_space<vmem>>, %arg11: memref<64x192xbf16, #tpu.memory_space<vmem>>, %arg12: memref<64x192xbf16, #tpu.memory_space<vmem>>, %arg13: memref<2x16x64xf32, #tpu.memory_space<vmem>>) attributes {dimension_semantics = [#tpu.dimension_semantics<arbitrary>], iteration_bounds = array<i64: 2>, scalar_prefetch = 0 : i64, scratch_operands = 3 : i64, tpu.core_type = #tpu.core_type<tc>, window_params = [{transform_indices = @transform_0, window_bounds = array<i64: 1, 64, 128>}, {transform_indices = @transform_1, window_bounds = array<i64: 1, 64, 128>}, {pipeline_mode = #tpu.pipeline_mode<synchronous>, transform_indices = @transform_2, window_bounds = array<i64: 128, 192>}, {pipeline_mode = #tpu.pipeline_mode<synchronous>, transform_indices = @transform_3, window_bounds = array<i64: 128, 192>}, {pipeline_mode = #tpu.pipeline_mode<synchronous>, transform_indices = @transform_4, window_bounds = array<i64: 64, 192>}, {pipeline_mode = #tpu.pipeline_mode<synchronous>, transform_indices = @transform_5, window_bounds = array<i64: 64, 192>}, {pipeline_mode = #tpu.pipeline_mode<synchronous>, transform_indices = @transform_6, window_bounds = array<i64: 1, 384>}, {pipeline_mode = #tpu.pipeline_mode<synchronous>, transform_indices = @transform_7, window_bounds = array<i64: 1, 128>}, {transform_indices = @transform_8, window_bounds = array<i64: 4, 16, 128>}, {pipeline_mode = #tpu.pipeline_mode<synchronous>, transform_indices = @transform_9, window_bounds = array<i64: 2, 16, 64>}]} {
    %c0_i32 = arith.constant 0 : i32
    %0 = arith.cmpi eq, %arg0, %c0_i32 : i32
    %1 = arith.extui %0 : i1 to i32
    %c0_i32_0 = arith.constant 0 : i32
    %2 = arith.cmpi ne, %1, %c0_i32_0 : i32
    scf.if %2 {
      %cst_98 = arith.constant 0.000000e+00 : f32
      %346 = vector.broadcast %cst_98 : f32 to vector<2x16x64xf32>
      %c0_99 = arith.constant 0 : index
      %c0_100 = arith.constant 0 : index
      %c0_101 = arith.constant 0 : index
      %347 = vector.load %arg13[%c0_99, %c0_100, %c0_101] : memref<2x16x64xf32, #tpu.memory_space<vmem>>, vector<2x16x64xf32>
      tpu.vector_store %arg13[%c0_99, %c0_100, %c0_101], %346 {strides = array<i32>} : memref<2x16x64xf32, #tpu.memory_space<vmem>>, vector<2x16x64xf32>,
    } else {
    }
    %c0 = arith.constant 0 : index
    %c0_1 = arith.constant 0 : index
    %c0_2 = arith.constant 0 : index
    %3 = vector.load %arg1[%c0, %c0_1, %c0_2] : memref<1x64x128xbf16, #tpu.memory_space<vmem>>, vector<1x64x128xbf16>
    %4 = vector.shape_cast %3 : vector<1x64x128xbf16> to vector<64x128xbf16>
    %c0_3 = arith.constant 0 : index
    %c0_4 = arith.constant 0 : index
    %5 = vector.load %arg3[%c0_3, %c0_4] : memref<128x192xbf16, #tpu.memory_space<vmem>>, vector<128x192xbf16>
    %cst = arith.constant dense<0.000000e+00> : vector<64x192xf32>
    %6 = tpu.matmul %4, %5, %cst {dimension_numbers = #tpu.dot_dimension_numbers<[1], [0], [0], [1], [0, 0, 1, 1], [], []>} : vector<64x128xbf16>, vector<128x192xbf16>, vector<64x192xf32> -> vector<64x192xf32>
    %7 = arith.truncf %6 : vector<64x192xf32> to vector<64x192xbf16>
    %c0_5 = arith.constant 0 : index
    %c0_6 = arith.constant 0 : index
    %8 = vector.load %arg11[%c0_5, %c0_6] : memref<64x192xbf16, #tpu.memory_space<vmem>>, vector<64x192xbf16>
    tpu.vector_store %arg11[%c0_5, %c0_6], %7 {strides = array<i32>} : memref<64x192xbf16, #tpu.memory_space<vmem>>, vector<64x192xbf16>,
    %c0_7 = arith.constant 0 : index
    %c0_8 = arith.constant 0 : index
    %c0_9 = arith.constant 0 : index
    %9 = vector.load %arg2[%c0_7, %c0_8, %c0_9] : memref<1x64x128xbf16, #tpu.memory_space<vmem>>, vector<1x64x128xbf16>
    %10 = vector.shape_cast %9 : vector<1x64x128xbf16> to vector<64x128xbf16>
    %c0_10 = arith.constant 0 : index
    %c0_11 = arith.constant 0 : index
    %11 = vector.load %arg4[%c0_10, %c0_11] : memref<128x192xbf16, #tpu.memory_space<vmem>>, vector<128x192xbf16>
    %cst_12 = arith.constant dense<0.000000e+00> : vector<64x192xf32>
    %12 = tpu.matmul %10, %11, %cst_12 {dimension_numbers = #tpu.dot_dimension_numbers<[1], [0], [0], [1], [0, 0, 1, 1], [], []>} : vector<64x128xbf16>, vector<128x192xbf16>, vector<64x192xf32> -> vector<64x192xf32>
    %13 = arith.truncf %12 : vector<64x192xf32> to vector<64x192xbf16>
    %c0_13 = arith.constant 0 : index
    %c0_14 = arith.constant 0 : index
    %14 = vector.load %arg12[%c0_13, %c0_14] : memref<64x192xbf16, #tpu.memory_space<vmem>>, vector<64x192xbf16>
    tpu.vector_store %arg12[%c0_13, %c0_14], %13 {strides = array<i32>} : memref<64x192xbf16, #tpu.memory_space<vmem>>, vector<64x192xbf16>,
    %c0_15 = arith.constant 0 : index
    %c0_16 = arith.constant 0 : index
    %15 = vector.load %arg5[%c0_15, %c0_16] : memref<64x192xbf16, #tpu.memory_space<vmem>>, vector<64x192xbf16>
    %c0_17 = arith.constant 0 : index
    %c0_18 = arith.constant 0 : index
    %16 = vector.load %arg6[%c0_17, %c0_18] : memref<64x192xbf16, #tpu.memory_space<vmem>>, vector<64x192xbf16>
    %c0_19 = arith.constant 0 : index
    %c0_20 = arith.constant 0 : index
    %17 = vector.load %arg7[%c0_19, %c0_20] : memref<1x384xf32, #tpu.memory_space<vmem>>, vector<1x192xf32>
    %18 = vector.shape_cast %17 : vector<1x192xf32> to vector<1x192xf32>
    %19 = vector.broadcast %18 : vector<1x192xf32> to vector<16x192xf32>
    %c0_21 = arith.constant 0 : index
    %c192 = arith.constant 192 : index
    %20 = vector.load %arg7[%c0_21, %c192] : memref<1x384xf32, #tpu.memory_space<vmem>>, vector<1x192xf32>
    %21 = vector.shape_cast %20 : vector<1x192xf32> to vector<1x192xf32>
    %22 = vector.broadcast %21 : vector<1x192xf32> to vector<16x192xf32>
    %c0_22 = arith.constant 0 : index
    %c0_23 = arith.constant 0 : index
    %23 = vector.load %arg8[%c0_22, %c0_23] : memref<1x128xf32, #tpu.memory_space<vmem>>, vector<1x64xf32>
    %24 = vector.shape_cast %23 : vector<1x64xf32> to vector<1x64xf32>
    %25 = vector.broadcast %24 : vector<1x64xf32> to vector<16x64xf32>
    %c0_24 = arith.constant 0 : index
    %c64 = arith.constant 64 : index
    %26 = vector.load %arg8[%c0_24, %c64] : memref<1x128xf32, #tpu.memory_space<vmem>>, vector<1x64xf32>
    %27 = vector.shape_cast %26 : vector<1x64xf32> to vector<1x64xf32>
    %28 = vector.broadcast %27 : vector<1x64xf32> to vector<16x64xf32>
    %c0_25 = arith.constant 0 : index
    %c0_26 = arith.constant 0 : index
    %c0_27 = arith.constant 0 : index
    %29 = vector.load %arg13[%c0_25, %c0_26, %c0_27] : memref<2x16x64xf32, #tpu.memory_space<vmem>>, vector<1x16x64xf32>
    %30 = vector.shape_cast %29 : vector<1x16x64xf32> to vector<16x64xf32>
    %c1 = arith.constant 1 : index
    %c0_28 = arith.constant 0 : index
    %c0_29 = arith.constant 0 : index
    %31 = vector.load %arg13[%c1, %c0_28, %c0_29] : memref<2x16x64xf32, #tpu.memory_space<vmem>>, vector<1x16x64xf32>
    %32 = vector.shape_cast %31 : vector<1x16x64xf32> to vector<16x64xf32>
    %c0_i32_30 = arith.constant 0 : i32
    %c16_i32 = arith.constant 16 : i32
    %33 = arith.muli %c0_i32_30, %c16_i32 : i32
    %34 = tpu.assume_multiple %33, 16 : i32
    %c3_i32 = arith.constant 3 : i32
    %35 = arith.subi %c3_i32, %c0_i32_30 : i32
    %c16_i32_31 = arith.constant 16 : i32
    %36 = arith.muli %35, %c16_i32_31 : i32
    %37 = tpu.assume_multiple %36, 16 : i32
    %38 = arith.index_cast %34 : i32 to index
    %c0_32 = arith.constant 0 : index
    %39 = vector.load %arg11[%38, %c0_32] : memref<64x192xbf16, #tpu.memory_space<vmem>>, vector<16x192xbf16>
    %40 = arith.extf %39 : vector<16x192xbf16> to vector<16x192xf32>
    %41 = arith.index_cast %37 : i32 to index
    %c0_33 = arith.constant 0 : index
    %42 = vector.load %arg12[%41, %c0_33] : memref<64x192xbf16, #tpu.memory_space<vmem>>, vector<16x192xbf16>
    %43 = arith.extf %42 : vector<16x192xbf16> to vector<16x192xf32>
    %44 = arith.truncf %30 : vector<16x64xf32> to vector<16x64xbf16>
    %cst_34 = arith.constant dense<0.000000e+00> : vector<16x192xf32>
    %45 = tpu.matmul %44, %15, %cst_34 {dimension_numbers = #tpu.dot_dimension_numbers<[1], [0], [0], [1], [0, 0, 1, 1], [], []>} : vector<16x64xbf16>, vector<64x192xbf16>, vector<16x192xf32> -> vector<16x192xf32>
    %46 = arith.addf %45, %19 : vector<16x192xf32>
    %47 = arith.truncf %32 : vector<16x64xf32> to vector<16x64xbf16>
    %cst_35 = arith.constant dense<0.000000e+00> : vector<16x192xf32>
    %48 = tpu.matmul %47, %16, %cst_35 {dimension_numbers = #tpu.dot_dimension_numbers<[1], [0], [0], [1], [0, 0, 1, 1], [], []>} : vector<16x64xbf16>, vector<64x192xbf16>, vector<16x192xf32> -> vector<16x192xf32>
    %49 = arith.addf %48, %22 : vector<16x192xf32>
    %50 = vector.extract_strided_slice %40 {offsets = [0, 0], sizes = [16, 64], strides = [1, 1]} : vector<16x192xf32> to vector<16x64xf32>
    %51 = vector.extract_strided_slice %46 {offsets = [0, 0], sizes = [16, 64], strides = [1, 1]} : vector<16x192xf32> to vector<16x64xf32>
    %52 = arith.addf %50, %51 : vector<16x64xf32>
    %53 = arith.negf %52 : vector<16x64xf32>
    %54 = math.exp %53 : vector<16x64xf32>
    %cst_36 = arith.constant 1.000000e+00 : f32
    %55 = vector.broadcast %cst_36 : f32 to vector<16x64xf32>
    %56 = arith.addf %55, %54 : vector<16x64xf32>
    %57 = arith.divf %55, %56 : vector<16x64xf32>
    %58 = vector.extract_strided_slice %40 {offsets = [0, 64], sizes = [16, 64], strides = [1, 1]} : vector<16x192xf32> to vector<16x64xf32>
    %59 = vector.extract_strided_slice %46 {offsets = [0, 64], sizes = [16, 64], strides = [1, 1]} : vector<16x192xf32> to vector<16x64xf32>
    %60 = arith.addf %58, %59 : vector<16x64xf32>
    %61 = arith.negf %60 : vector<16x64xf32>
    %62 = math.exp %61 : vector<16x64xf32>
    %cst_37 = arith.constant 1.000000e+00 : f32
    %63 = vector.broadcast %cst_37 : f32 to vector<16x64xf32>
    %64 = arith.addf %63, %62 : vector<16x64xf32>
    %65 = arith.divf %63, %64 : vector<16x64xf32>
    %66 = vector.extract_strided_slice %40 {offsets = [0, 128], sizes = [16, 64], strides = [1, 1]} : vector<16x192xf32> to vector<16x64xf32>
    %67 = arith.addf %66, %25 : vector<16x64xf32>
    %68 = vector.extract_strided_slice %46 {offsets = [0, 128], sizes = [16, 64], strides = [1, 1]} : vector<16x192xf32> to vector<16x64xf32>
    %69 = arith.mulf %57, %68 : vector<16x64xf32>
    %70 = arith.addf %67, %69 : vector<16x64xf32>
    %71 = math.tanh %70 : vector<16x64xf32>
    %72 = vector.extract_strided_slice %43 {offsets = [0, 0], sizes = [16, 64], strides = [1, 1]} : vector<16x192xf32> to vector<16x64xf32>
    %73 = vector.extract_strided_slice %49 {offsets = [0, 0], sizes = [16, 64], strides = [1, 1]} : vector<16x192xf32> to vector<16x64xf32>
    %74 = arith.addf %72, %73 : vector<16x64xf32>
    %75 = arith.negf %74 : vector<16x64xf32>
    %76 = math.exp %75 : vector<16x64xf32>
    %cst_38 = arith.constant 1.000000e+00 : f32
    %77 = vector.broadcast %cst_38 : f32 to vector<16x64xf32>
    %78 = arith.addf %77, %76 : vector<16x64xf32>
    %79 = arith.divf %77, %78 : vector<16x64xf32>
    %80 = vector.extract_strided_slice %43 {offsets = [0, 64], sizes = [16, 64], strides = [1, 1]} : vector<16x192xf32> to vector<16x64xf32>
    %81 = vector.extract_strided_slice %49 {offsets = [0, 64], sizes = [16, 64], strides = [1, 1]} : vector<16x192xf32> to vector<16x64xf32>
    %82 = arith.addf %80, %81 : vector<16x64xf32>
    %83 = arith.negf %82 : vector<16x64xf32>
    %84 = math.exp %83 : vector<16x64xf32>
    %cst_39 = arith.constant 1.000000e+00 : f32
    %85 = vector.broadcast %cst_39 : f32 to vector<16x64xf32>
    %86 = arith.addf %85, %84 : vector<16x64xf32>
    %87 = arith.divf %85, %86 : vector<16x64xf32>
    %88 = vector.extract_strided_slice %43 {offsets = [0, 128], sizes = [16, 64], strides = [1, 1]} : vector<16x192xf32> to vector<16x64xf32>
    %89 = arith.addf %88, %28 : vector<16x64xf32>
    %90 = vector.extract_strided_slice %49 {offsets = [0, 128], sizes = [16, 64], strides = [1, 1]} : vector<16x192xf32> to vector<16x64xf32>
    %91 = arith.mulf %79, %90 : vector<16x64xf32>
    %92 = arith.addf %89, %91 : vector<16x64xf32>
    %93 = math.tanh %92 : vector<16x64xf32>
    %cst_40 = arith.constant 1.000000e+00 : f32
    %94 = vector.broadcast %cst_40 : f32 to vector<16x64xf32>
    %95 = arith.subf %94, %65 : vector<16x64xf32>
    %96 = arith.mulf %95, %71 : vector<16x64xf32>
    %97 = arith.mulf %65, %30 : vector<16x64xf32>
    %98 = arith.addf %96, %97 : vector<16x64xf32>
    %cst_41 = arith.constant 1.000000e+00 : f32
    %99 = vector.broadcast %cst_41 : f32 to vector<16x64xf32>
    %100 = arith.subf %99, %87 : vector<16x64xf32>
    %101 = arith.mulf %100, %93 : vector<16x64xf32>
    %102 = arith.mulf %87, %32 : vector<16x64xf32>
    %103 = arith.addf %101, %102 : vector<16x64xf32>
    %104 = tpu.concatenate %98, %103 in 1 : vector<16x64xf32>, vector<16x64xf32> -> vector<16x128xf32>
    %105 = arith.index_cast %c0_i32_30 : i32 to index
    %c0_42 = arith.constant 0 : index
    %c0_43 = arith.constant 0 : index
    %106 = vector.load %arg9[%105, %c0_42, %c0_43] : memref<4x16x128xf32, #tpu.memory_space<vmem>>, vector<1x16x128xf32>
    %107 = vector.shape_cast %106 : vector<1x16x128xf32> to vector<16x128xf32>
    %108 = vector.shape_cast %104 : vector<16x128xf32> to vector<1x16x128xf32>
    tpu.vector_store %arg9[%105, %c0_42, %c0_43], %108 {strides = array<i32>} : memref<4x16x128xf32, #tpu.memory_space<vmem>>, vector<1x16x128xf32>,
    %c1_i32 = arith.constant 1 : i32
    %c16_i32_44 = arith.constant 16 : i32
    %109 = arith.muli %c1_i32, %c16_i32_44 : i32
    %110 = tpu.assume_multiple %109, 16 : i32
    %c3_i32_45 = arith.constant 3 : i32
    %111 = arith.subi %c3_i32_45, %c1_i32 : i32
    %c16_i32_46 = arith.constant 16 : i32
    %112 = arith.muli %111, %c16_i32_46 : i32
    %113 = tpu.assume_multiple %112, 16 : i32
    %114 = arith.index_cast %110 : i32 to index
    %c0_47 = arith.constant 0 : index
    %115 = vector.load %arg11[%114, %c0_47] : memref<64x192xbf16, #tpu.memory_space<vmem>>, vector<16x192xbf16>
    %116 = arith.extf %115 : vector<16x192xbf16> to vector<16x192xf32>
    %117 = arith.index_cast %113 : i32 to index
    %c0_48 = arith.constant 0 : index
    %118 = vector.load %arg12[%117, %c0_48] : memref<64x192xbf16, #tpu.memory_space<vmem>>, vector<16x192xbf16>
    %119 = arith.extf %118 : vector<16x192xbf16> to vector<16x192xf32>
    %120 = arith.truncf %98 : vector<16x64xf32> to vector<16x64xbf16>
    %cst_49 = arith.constant dense<0.000000e+00> : vector<16x192xf32>
    %121 = tpu.matmul %120, %15, %cst_49 {dimension_numbers = #tpu.dot_dimension_numbers<[1], [0], [0], [1], [0, 0, 1, 1], [], []>} : vector<16x64xbf16>, vector<64x192xbf16>, vector<16x192xf32> -> vector<16x192xf32>
    %122 = arith.addf %121, %19 : vector<16x192xf32>
    %123 = arith.truncf %103 : vector<16x64xf32> to vector<16x64xbf16>
    %cst_50 = arith.constant dense<0.000000e+00> : vector<16x192xf32>
    %124 = tpu.matmul %123, %16, %cst_50 {dimension_numbers = #tpu.dot_dimension_numbers<[1], [0], [0], [1], [0, 0, 1, 1], [], []>} : vector<16x64xbf16>, vector<64x192xbf16>, vector<16x192xf32> -> vector<16x192xf32>
    %125 = arith.addf %124, %22 : vector<16x192xf32>
    %126 = vector.extract_strided_slice %116 {offsets = [0, 0], sizes = [16, 64], strides = [1, 1]} : vector<16x192xf32> to vector<16x64xf32>
    %127 = vector.extract_strided_slice %122 {offsets = [0, 0], sizes = [16, 64], strides = [1, 1]} : vector<16x192xf32> to vector<16x64xf32>
    %128 = arith.addf %126, %127 : vector<16x64xf32>
    %129 = arith.negf %128 : vector<16x64xf32>
    %130 = math.exp %129 : vector<16x64xf32>
    %cst_51 = arith.constant 1.000000e+00 : f32
    %131 = vector.broadcast %cst_51 : f32 to vector<16x64xf32>
    %132 = arith.addf %131, %130 : vector<16x64xf32>
    %133 = arith.divf %131, %132 : vector<16x64xf32>
    %134 = vector.extract_strided_slice %116 {offsets = [0, 64], sizes = [16, 64], strides = [1, 1]} : vector<16x192xf32> to vector<16x64xf32>
    %135 = vector.extract_strided_slice %122 {offsets = [0, 64], sizes = [16, 64], strides = [1, 1]} : vector<16x192xf32> to vector<16x64xf32>
    %136 = arith.addf %134, %135 : vector<16x64xf32>
    %137 = arith.negf %136 : vector<16x64xf32>
    %138 = math.exp %137 : vector<16x64xf32>
    %cst_52 = arith.constant 1.000000e+00 : f32
    %139 = vector.broadcast %cst_52 : f32 to vector<16x64xf32>
    %140 = arith.addf %139, %138 : vector<16x64xf32>
    %141 = arith.divf %139, %140 : vector<16x64xf32>
    %142 = vector.extract_strided_slice %116 {offsets = [0, 128], sizes = [16, 64], strides = [1, 1]} : vector<16x192xf32> to vector<16x64xf32>
    %143 = arith.addf %142, %25 : vector<16x64xf32>
    %144 = vector.extract_strided_slice %122 {offsets = [0, 128], sizes = [16, 64], strides = [1, 1]} : vector<16x192xf32> to vector<16x64xf32>
    %145 = arith.mulf %133, %144 : vector<16x64xf32>
    %146 = arith.addf %143, %145 : vector<16x64xf32>
    %147 = math.tanh %146 : vector<16x64xf32>
    %148 = vector.extract_strided_slice %119 {offsets = [0, 0], sizes = [16, 64], strides = [1, 1]} : vector<16x192xf32> to vector<16x64xf32>
    %149 = vector.extract_strided_slice %125 {offsets = [0, 0], sizes = [16, 64], strides = [1, 1]} : vector<16x192xf32> to vector<16x64xf32>
    %150 = arith.addf %148, %149 : vector<16x64xf32>
    %151 = arith.negf %150 : vector<16x64xf32>
    %152 = math.exp %151 : vector<16x64xf32>
    %cst_53 = arith.constant 1.000000e+00 : f32
    %153 = vector.broadcast %cst_53 : f32 to vector<16x64xf32>
    %154 = arith.addf %153, %152 : vector<16x64xf32>
    %155 = arith.divf %153, %154 : vector<16x64xf32>
    %156 = vector.extract_strided_slice %119 {offsets = [0, 64], sizes = [16, 64], strides = [1, 1]} : vector<16x192xf32> to vector<16x64xf32>
    %157 = vector.extract_strided_slice %125 {offsets = [0, 64], sizes = [16, 64], strides = [1, 1]} : vector<16x192xf32> to vector<16x64xf32>
    %158 = arith.addf %156, %157 : vector<16x64xf32>
    %159 = arith.negf %158 : vector<16x64xf32>
    %160 = math.exp %159 : vector<16x64xf32>
    %cst_54 = arith.constant 1.000000e+00 : f32
    %161 = vector.broadcast %cst_54 : f32 to vector<16x64xf32>
    %162 = arith.addf %161, %160 : vector<16x64xf32>
    %163 = arith.divf %161, %162 : vector<16x64xf32>
    %164 = vector.extract_strided_slice %119 {offsets = [0, 128], sizes = [16, 64], strides = [1, 1]} : vector<16x192xf32> to vector<16x64xf32>
    %165 = arith.addf %164, %28 : vector<16x64xf32>
    %166 = vector.extract_strided_slice %125 {offsets = [0, 128], sizes = [16, 64], strides = [1, 1]} : vector<16x192xf32> to vector<16x64xf32>
    %167 = arith.mulf %155, %166 : vector<16x64xf32>
    %168 = arith.addf %165, %167 : vector<16x64xf32>
    %169 = math.tanh %168 : vector<16x64xf32>
    %cst_55 = arith.constant 1.000000e+00 : f32
    %170 = vector.broadcast %cst_55 : f32 to vector<16x64xf32>
    %171 = arith.subf %170, %141 : vector<16x64xf32>
    %172 = arith.mulf %171, %147 : vector<16x64xf32>
    %173 = arith.mulf %141, %98 : vector<16x64xf32>
    %174 = arith.addf %172, %173 : vector<16x64xf32>
    %cst_56 = arith.constant 1.000000e+00 : f32
    %175 = vector.broadcast %cst_56 : f32 to vector<16x64xf32>
    %176 = arith.subf %175, %163 : vector<16x64xf32>
    %177 = arith.mulf %176, %169 : vector<16x64xf32>
    %178 = arith.mulf %163, %103 : vector<16x64xf32>
    %179 = arith.addf %177, %178 : vector<16x64xf32>
    %180 = tpu.concatenate %174, %179 in 1 : vector<16x64xf32>, vector<16x64xf32> -> vector<16x128xf32>
    %181 = arith.index_cast %c1_i32 : i32 to index
    %c0_57 = arith.constant 0 : index
    %c0_58 = arith.constant 0 : index
    %182 = vector.load %arg9[%181, %c0_57, %c0_58] : memref<4x16x128xf32, #tpu.memory_space<vmem>>, vector<1x16x128xf32>
    %183 = vector.shape_cast %182 : vector<1x16x128xf32> to vector<16x128xf32>
    %184 = vector.shape_cast %180 : vector<16x128xf32> to vector<1x16x128xf32>
    tpu.vector_store %arg9[%181, %c0_57, %c0_58], %184 {strides = array<i32>} : memref<4x16x128xf32, #tpu.memory_space<vmem>>, vector<1x16x128xf32>,
    %c2_i32 = arith.constant 2 : i32
    %c16_i32_59 = arith.constant 16 : i32
    %185 = arith.muli %c2_i32, %c16_i32_59 : i32
    %186 = tpu.assume_multiple %185, 16 : i32
    %c3_i32_60 = arith.constant 3 : i32
    %187 = arith.subi %c3_i32_60, %c2_i32 : i32
    %c16_i32_61 = arith.constant 16 : i32
    %188 = arith.muli %187, %c16_i32_61 : i32
    %189 = tpu.assume_multiple %188, 16 : i32
    %190 = arith.index_cast %186 : i32 to index
    %c0_62 = arith.constant 0 : index
    %191 = vector.load %arg11[%190, %c0_62] : memref<64x192xbf16, #tpu.memory_space<vmem>>, vector<16x192xbf16>
    %192 = arith.extf %191 : vector<16x192xbf16> to vector<16x192xf32>
    %193 = arith.index_cast %189 : i32 to index
    %c0_63 = arith.constant 0 : index
    %194 = vector.load %arg12[%193, %c0_63] : memref<64x192xbf16, #tpu.memory_space<vmem>>, vector<16x192xbf16>
    %195 = arith.extf %194 : vector<16x192xbf16> to vector<16x192xf32>
    %196 = arith.truncf %174 : vector<16x64xf32> to vector<16x64xbf16>
    %cst_64 = arith.constant dense<0.000000e+00> : vector<16x192xf32>
    %197 = tpu.matmul %196, %15, %cst_64 {dimension_numbers = #tpu.dot_dimension_numbers<[1], [0], [0], [1], [0, 0, 1, 1], [], []>} : vector<16x64xbf16>, vector<64x192xbf16>, vector<16x192xf32> -> vector<16x192xf32>
    %198 = arith.addf %197, %19 : vector<16x192xf32>
    %199 = arith.truncf %179 : vector<16x64xf32> to vector<16x64xbf16>
    %cst_65 = arith.constant dense<0.000000e+00> : vector<16x192xf32>
    %200 = tpu.matmul %199, %16, %cst_65 {dimension_numbers = #tpu.dot_dimension_numbers<[1], [0], [0], [1], [0, 0, 1, 1], [], []>} : vector<16x64xbf16>, vector<64x192xbf16>, vector<16x192xf32> -> vector<16x192xf32>
    %201 = arith.addf %200, %22 : vector<16x192xf32>
    %202 = vector.extract_strided_slice %192 {offsets = [0, 0], sizes = [16, 64], strides = [1, 1]} : vector<16x192xf32> to vector<16x64xf32>
    %203 = vector.extract_strided_slice %198 {offsets = [0, 0], sizes = [16, 64], strides = [1, 1]} : vector<16x192xf32> to vector<16x64xf32>
    %204 = arith.addf %202, %203 : vector<16x64xf32>
    %205 = arith.negf %204 : vector<16x64xf32>
    %206 = math.exp %205 : vector<16x64xf32>
    %cst_66 = arith.constant 1.000000e+00 : f32
    %207 = vector.broadcast %cst_66 : f32 to vector<16x64xf32>
    %208 = arith.addf %207, %206 : vector<16x64xf32>
    %209 = arith.divf %207, %208 : vector<16x64xf32>
    %210 = vector.extract_strided_slice %192 {offsets = [0, 64], sizes = [16, 64], strides = [1, 1]} : vector<16x192xf32> to vector<16x64xf32>
    %211 = vector.extract_strided_slice %198 {offsets = [0, 64], sizes = [16, 64], strides = [1, 1]} : vector<16x192xf32> to vector<16x64xf32>
    %212 = arith.addf %210, %211 : vector<16x64xf32>
    %213 = arith.negf %212 : vector<16x64xf32>
    %214 = math.exp %213 : vector<16x64xf32>
    %cst_67 = arith.constant 1.000000e+00 : f32
    %215 = vector.broadcast %cst_67 : f32 to vector<16x64xf32>
    %216 = arith.addf %215, %214 : vector<16x64xf32>
    %217 = arith.divf %215, %216 : vector<16x64xf32>
    %218 = vector.extract_strided_slice %192 {offsets = [0, 128], sizes = [16, 64], strides = [1, 1]} : vector<16x192xf32> to vector<16x64xf32>
    %219 = arith.addf %218, %25 : vector<16x64xf32>
    %220 = vector.extract_strided_slice %198 {offsets = [0, 128], sizes = [16, 64], strides = [1, 1]} : vector<16x192xf32> to vector<16x64xf32>
    %221 = arith.mulf %209, %220 : vector<16x64xf32>
    %222 = arith.addf %219, %221 : vector<16x64xf32>
    %223 = math.tanh %222 : vector<16x64xf32>
    %224 = vector.extract_strided_slice %195 {offsets = [0, 0], sizes = [16, 64], strides = [1, 1]} : vector<16x192xf32> to vector<16x64xf32>
    %225 = vector.extract_strided_slice %201 {offsets = [0, 0], sizes = [16, 64], strides = [1, 1]} : vector<16x192xf32> to vector<16x64xf32>
    %226 = arith.addf %224, %225 : vector<16x64xf32>
    %227 = arith.negf %226 : vector<16x64xf32>
    %228 = math.exp %227 : vector<16x64xf32>
    %cst_68 = arith.constant 1.000000e+00 : f32
    %229 = vector.broadcast %cst_68 : f32 to vector<16x64xf32>
    %230 = arith.addf %229, %228 : vector<16x64xf32>
    %231 = arith.divf %229, %230 : vector<16x64xf32>
    %232 = vector.extract_strided_slice %195 {offsets = [0, 64], sizes = [16, 64], strides = [1, 1]} : vector<16x192xf32> to vector<16x64xf32>
    %233 = vector.extract_strided_slice %201 {offsets = [0, 64], sizes = [16, 64], strides = [1, 1]} : vector<16x192xf32> to vector<16x64xf32>
    %234 = arith.addf %232, %233 : vector<16x64xf32>
    %235 = arith.negf %234 : vector<16x64xf32>
    %236 = math.exp %235 : vector<16x64xf32>
    %cst_69 = arith.constant 1.000000e+00 : f32
    %237 = vector.broadcast %cst_69 : f32 to vector<16x64xf32>
    %238 = arith.addf %237, %236 : vector<16x64xf32>
    %239 = arith.divf %237, %238 : vector<16x64xf32>
    %240 = vector.extract_strided_slice %195 {offsets = [0, 128], sizes = [16, 64], strides = [1, 1]} : vector<16x192xf32> to vector<16x64xf32>
    %241 = arith.addf %240, %28 : vector<16x64xf32>
    %242 = vector.extract_strided_slice %201 {offsets = [0, 128], sizes = [16, 64], strides = [1, 1]} : vector<16x192xf32> to vector<16x64xf32>
    %243 = arith.mulf %231, %242 : vector<16x64xf32>
    %244 = arith.addf %241, %243 : vector<16x64xf32>
    %245 = math.tanh %244 : vector<16x64xf32>
    %cst_70 = arith.constant 1.000000e+00 : f32
    %246 = vector.broadcast %cst_70 : f32 to vector<16x64xf32>
    %247 = arith.subf %246, %217 : vector<16x64xf32>
    %248 = arith.mulf %247, %223 : vector<16x64xf32>
    %249 = arith.mulf %217, %174 : vector<16x64xf32>
    %250 = arith.addf %248, %249 : vector<16x64xf32>
    %cst_71 = arith.constant 1.000000e+00 : f32
    %251 = vector.broadcast %cst_71 : f32 to vector<16x64xf32>
    %252 = arith.subf %251, %239 : vector<16x64xf32>
    %253 = arith.mulf %252, %245 : vector<16x64xf32>
    %254 = arith.mulf %239, %179 : vector<16x64xf32>
    %255 = arith.addf %253, %254 : vector<16x64xf32>
    %256 = tpu.concatenate %250, %255 in 1 : vector<16x64xf32>, vector<16x64xf32> -> vector<16x128xf32>
    %257 = arith.index_cast %c2_i32 : i32 to index
    %c0_72 = arith.constant 0 : index
    %c0_73 = arith.constant 0 : index
    %258 = vector.load %arg9[%257, %c0_72, %c0_73] : memref<4x16x128xf32, #tpu.memory_space<vmem>>, vector<1x16x128xf32>
    %259 = vector.shape_cast %258 : vector<1x16x128xf32> to vector<16x128xf32>
    %260 = vector.shape_cast %256 : vector<16x128xf32> to vector<1x16x128xf32>
    tpu.vector_store %arg9[%257, %c0_72, %c0_73], %260 {strides = array<i32>} : memref<4x16x128xf32, #tpu.memory_space<vmem>>, vector<1x16x128xf32>,
    %c3_i32_74 = arith.constant 3 : i32
    %c16_i32_75 = arith.constant 16 : i32
    %261 = arith.muli %c3_i32_74, %c16_i32_75 : i32
    %262 = tpu.assume_multiple %261, 16 : i32
    %c3_i32_76 = arith.constant 3 : i32
    %263 = arith.subi %c3_i32_76, %c3_i32_74 : i32
    %c16_i32_77 = arith.constant 16 : i32
    %264 = arith.muli %263, %c16_i32_77 : i32
    %265 = tpu.assume_multiple %264, 16 : i32
    %266 = arith.index_cast %262 : i32 to index
    %c0_78 = arith.constant 0 : index
    %267 = vector.load %arg11[%266, %c0_78] : memref<64x192xbf16, #tpu.memory_space<vmem>>, vector<16x192xbf16>
    %268 = arith.extf %267 : vector<16x192xbf16> to vector<16x192xf32>
    %269 = arith.index_cast %265 : i32 to index
    %c0_79 = arith.constant 0 : index
    %270 = vector.load %arg12[%269, %c0_79] : memref<64x192xbf16, #tpu.memory_space<vmem>>, vector<16x192xbf16>
    %271 = arith.extf %270 : vector<16x192xbf16> to vector<16x192xf32>
    %272 = arith.truncf %250 : vector<16x64xf32> to vector<16x64xbf16>
    %cst_80 = arith.constant dense<0.000000e+00> : vector<16x192xf32>
    %273 = tpu.matmul %272, %15, %cst_80 {dimension_numbers = #tpu.dot_dimension_numbers<[1], [0], [0], [1], [0, 0, 1, 1], [], []>} : vector<16x64xbf16>, vector<64x192xbf16>, vector<16x192xf32> -> vector<16x192xf32>
    %274 = arith.addf %273, %19 : vector<16x192xf32>
    %275 = arith.truncf %255 : vector<16x64xf32> to vector<16x64xbf16>
    %cst_81 = arith.constant dense<0.000000e+00> : vector<16x192xf32>
    %276 = tpu.matmul %275, %16, %cst_81 {dimension_numbers = #tpu.dot_dimension_numbers<[1], [0], [0], [1], [0, 0, 1, 1], [], []>} : vector<16x64xbf16>, vector<64x192xbf16>, vector<16x192xf32> -> vector<16x192xf32>
    %277 = arith.addf %276, %22 : vector<16x192xf32>
    %278 = vector.extract_strided_slice %268 {offsets = [0, 0], sizes = [16, 64], strides = [1, 1]} : vector<16x192xf32> to vector<16x64xf32>
    %279 = vector.extract_strided_slice %274 {offsets = [0, 0], sizes = [16, 64], strides = [1, 1]} : vector<16x192xf32> to vector<16x64xf32>
    %280 = arith.addf %278, %279 : vector<16x64xf32>
    %281 = arith.negf %280 : vector<16x64xf32>
    %282 = math.exp %281 : vector<16x64xf32>
    %cst_82 = arith.constant 1.000000e+00 : f32
    %283 = vector.broadcast %cst_82 : f32 to vector<16x64xf32>
    %284 = arith.addf %283, %282 : vector<16x64xf32>
    %285 = arith.divf %283, %284 : vector<16x64xf32>
    %286 = vector.extract_strided_slice %268 {offsets = [0, 64], sizes = [16, 64], strides = [1, 1]} : vector<16x192xf32> to vector<16x64xf32>
    %287 = vector.extract_strided_slice %274 {offsets = [0, 64], sizes = [16, 64], strides = [1, 1]} : vector<16x192xf32> to vector<16x64xf32>
    %288 = arith.addf %286, %287 : vector<16x64xf32>
    %289 = arith.negf %288 : vector<16x64xf32>
    %290 = math.exp %289 : vector<16x64xf32>
    %cst_83 = arith.constant 1.000000e+00 : f32
    %291 = vector.broadcast %cst_83 : f32 to vector<16x64xf32>
    %292 = arith.addf %291, %290 : vector<16x64xf32>
    %293 = arith.divf %291, %292 : vector<16x64xf32>
    %294 = vector.extract_strided_slice %268 {offsets = [0, 128], sizes = [16, 64], strides = [1, 1]} : vector<16x192xf32> to vector<16x64xf32>
    %295 = arith.addf %294, %25 : vector<16x64xf32>
    %296 = vector.extract_strided_slice %274 {offsets = [0, 128], sizes = [16, 64], strides = [1, 1]} : vector<16x192xf32> to vector<16x64xf32>
    %297 = arith.mulf %285, %296 : vector<16x64xf32>
    %298 = arith.addf %295, %297 : vector<16x64xf32>
    %299 = math.tanh %298 : vector<16x64xf32>
    %300 = vector.extract_strided_slice %271 {offsets = [0, 0], sizes = [16, 64], strides = [1, 1]} : vector<16x192xf32> to vector<16x64xf32>
    %301 = vector.extract_strided_slice %277 {offsets = [0, 0], sizes = [16, 64], strides = [1, 1]} : vector<16x192xf32> to vector<16x64xf32>
    %302 = arith.addf %300, %301 : vector<16x64xf32>
    %303 = arith.negf %302 : vector<16x64xf32>
    %304 = math.exp %303 : vector<16x64xf32>
    %cst_84 = arith.constant 1.000000e+00 : f32
    %305 = vector.broadcast %cst_84 : f32 to vector<16x64xf32>
    %306 = arith.addf %305, %304 : vector<16x64xf32>
    %307 = arith.divf %305, %306 : vector<16x64xf32>
    %308 = vector.extract_strided_slice %271 {offsets = [0, 64], sizes = [16, 64], strides = [1, 1]} : vector<16x192xf32> to vector<16x64xf32>
    %309 = vector.extract_strided_slice %277 {offsets = [0, 64], sizes = [16, 64], strides = [1, 1]} : vector<16x192xf32> to vector<16x64xf32>
    %310 = arith.addf %308, %309 : vector<16x64xf32>
    %311 = arith.negf %310 : vector<16x64xf32>
    %312 = math.exp %311 : vector<16x64xf32>
    %cst_85 = arith.constant 1.000000e+00 : f32
    %313 = vector.broadcast %cst_85 : f32 to vector<16x64xf32>
    %314 = arith.addf %313, %312 : vector<16x64xf32>
    %315 = arith.divf %313, %314 : vector<16x64xf32>
    %316 = vector.extract_strided_slice %271 {offsets = [0, 128], sizes = [16, 64], strides = [1, 1]} : vector<16x192xf32> to vector<16x64xf32>
    %317 = arith.addf %316, %28 : vector<16x64xf32>
    %318 = vector.extract_strided_slice %277 {offsets = [0, 128], sizes = [16, 64], strides = [1, 1]} : vector<16x192xf32> to vector<16x64xf32>
    %319 = arith.mulf %307, %318 : vector<16x64xf32>
    %320 = arith.addf %317, %319 : vector<16x64xf32>
    %321 = math.tanh %320 : vector<16x64xf32>
    %cst_86 = arith.constant 1.000000e+00 : f32
    %322 = vector.broadcast %cst_86 : f32 to vector<16x64xf32>
    %323 = arith.subf %322, %293 : vector<16x64xf32>
    %324 = arith.mulf %323, %299 : vector<16x64xf32>
    %325 = arith.mulf %293, %250 : vector<16x64xf32>
    %326 = arith.addf %324, %325 : vector<16x64xf32>
    %cst_87 = arith.constant 1.000000e+00 : f32
    %327 = vector.broadcast %cst_87 : f32 to vector<16x64xf32>
    %328 = arith.subf %327, %315 : vector<16x64xf32>
    %329 = arith.mulf %328, %321 : vector<16x64xf32>
    %330 = arith.mulf %315, %255 : vector<16x64xf32>
    %331 = arith.addf %329, %330 : vector<16x64xf32>
    %332 = tpu.concatenate %326, %331 in 1 : vector<16x64xf32>, vector<16x64xf32> -> vector<16x128xf32>
    %333 = arith.index_cast %c3_i32_74 : i32 to index
    %c0_88 = arith.constant 0 : index
    %c0_89 = arith.constant 0 : index
    %334 = vector.load %arg9[%333, %c0_88, %c0_89] : memref<4x16x128xf32, #tpu.memory_space<vmem>>, vector<1x16x128xf32>
    %335 = vector.shape_cast %334 : vector<1x16x128xf32> to vector<16x128xf32>
    %336 = vector.shape_cast %332 : vector<16x128xf32> to vector<1x16x128xf32>
    tpu.vector_store %arg9[%333, %c0_88, %c0_89], %336 {strides = array<i32>} : memref<4x16x128xf32, #tpu.memory_space<vmem>>, vector<1x16x128xf32>,
    %c4_i32 = arith.constant 4 : i32
    %c0_90 = arith.constant 0 : index
    %c0_91 = arith.constant 0 : index
    %c0_92 = arith.constant 0 : index
    %337 = vector.load %arg13[%c0_90, %c0_91, %c0_92] : memref<2x16x64xf32, #tpu.memory_space<vmem>>, vector<1x16x64xf32>
    %338 = vector.shape_cast %337 : vector<1x16x64xf32> to vector<16x64xf32>
    %339 = vector.shape_cast %326 : vector<16x64xf32> to vector<1x16x64xf32>
    tpu.vector_store %arg13[%c0_90, %c0_91, %c0_92], %339 {strides = array<i32>} : memref<2x16x64xf32, #tpu.memory_space<vmem>>, vector<1x16x64xf32>,
    %c1_93 = arith.constant 1 : index
    %c0_94 = arith.constant 0 : index
    %c0_95 = arith.constant 0 : index
    %340 = vector.load %arg13[%c1_93, %c0_94, %c0_95] : memref<2x16x64xf32, #tpu.memory_space<vmem>>, vector<1x16x64xf32>
    %341 = vector.shape_cast %340 : vector<1x16x64xf32> to vector<16x64xf32>
    %342 = vector.shape_cast %331 : vector<16x64xf32> to vector<1x16x64xf32>
    tpu.vector_store %arg13[%c1_93, %c0_94, %c0_95], %342 {strides = array<i32>} : memref<2x16x64xf32, #tpu.memory_space<vmem>>, vector<1x16x64xf32>,
    %c1_i32_96 = arith.constant 1 : i32
    %343 = arith.cmpi eq, %arg0, %c1_i32_96 : i32
    %344 = arith.extui %343 : i1 to i32
    %c0_i32_97 = arith.constant 0 : i32
    %345 = arith.cmpi ne, %344, %c0_i32_97 : i32
    scf.if %345 {
      %c0_98 = arith.constant 0 : index
      %c0_99 = arith.constant 0 : index
      %c0_100 = arith.constant 0 : index
      %346 = vector.load %arg10[%c0_98, %c0_99, %c0_100] : memref<2x16x64xf32, #tpu.memory_space<vmem>>, vector<1x16x64xf32>
      %347 = vector.shape_cast %346 : vector<1x16x64xf32> to vector<16x64xf32>
      %348 = vector.shape_cast %326 : vector<16x64xf32> to vector<1x16x64xf32>
      tpu.vector_store %arg10[%c0_98, %c0_99, %c0_100], %348 {strides = array<i32>} : memref<2x16x64xf32, #tpu.memory_space<vmem>>, vector<1x16x64xf32>,
      %c1_101 = arith.constant 1 : index
      %c0_102 = arith.constant 0 : index
      %c0_103 = arith.constant 0 : index
      %349 = vector.load %arg10[%c1_101, %c0_102, %c0_103] : memref<2x16x64xf32, #tpu.memory_space<vmem>>, vector<1x16x64xf32>
      %350 = vector.shape_cast %349 : vector<1x16x64xf32> to vector<16x64xf32>
      %351 = vector.shape_cast %331 : vector<16x64xf32> to vector<1x16x64xf32>
      tpu.vector_store %arg10[%c1_101, %c0_102, %c0_103], %351 {strides = array<i32>} : memref<2x16x64xf32, #tpu.memory_space<vmem>>, vector<1x16x64xf32>,
    } else {
    }
    return
  }
  func.func @transform_0(%arg0: i32) -> (i32, i32, i32) {
    %c0_i32 = arith.constant 0 : i32
    %c0_i32_0 = arith.constant 0 : i32
    %c0_i32_1 = arith.constant 0 : i32
    return %arg0, %c0_i32, %c0_i32_0 : i32, i32, i32
  }
  func.func @transform_1(%arg0: i32) -> (i32, i32, i32) {
    %c1_i32 = arith.constant 1 : i32
    %0 = arith.subi %c1_i32, %arg0 : i32
    %c0_i32 = arith.constant 0 : i32
    %c0_i32_0 = arith.constant 0 : i32
    %c0_i32_1 = arith.constant 0 : i32
    return %0, %c0_i32, %c0_i32_0 : i32, i32, i32
  }
  func.func @transform_2(%arg0: i32) -> (i32, i32) {
    %c0_i32 = arith.constant 0 : i32
    %c0_i32_0 = arith.constant 0 : i32
    %c0_i32_1 = arith.constant 0 : i32
    return %c0_i32, %c0_i32_0 : i32, i32
  }
  func.func @transform_3(%arg0: i32) -> (i32, i32) {
    %c0_i32 = arith.constant 0 : i32
    %c0_i32_0 = arith.constant 0 : i32
    %c0_i32_1 = arith.constant 0 : i32
    return %c0_i32, %c0_i32_0 : i32, i32
  }
  func.func @transform_4(%arg0: i32) -> (i32, i32) {
    %c0_i32 = arith.constant 0 : i32
    %c0_i32_0 = arith.constant 0 : i32
    %c0_i32_1 = arith.constant 0 : i32
    return %c0_i32, %c0_i32_0 : i32, i32
  }
  func.func @transform_5(%arg0: i32) -> (i32, i32) {
    %c0_i32 = arith.constant 0 : i32
    %c0_i32_0 = arith.constant 0 : i32
    %c0_i32_1 = arith.constant 0 : i32
    return %c0_i32, %c0_i32_0 : i32, i32
  }
  func.func @transform_6(%arg0: i32) -> (i32, i32) {
    %c0_i32 = arith.constant 0 : i32
    %c0_i32_0 = arith.constant 0 : i32
    %c0_i32_1 = arith.constant 0 : i32
    return %c0_i32, %c0_i32_0 : i32, i32
  }
  func.func @transform_7(%arg0: i32) -> (i32, i32) {
    %c0_i32 = arith.constant 0 : i32
    %c0_i32_0 = arith.constant 0 : i32
    %c0_i32_1 = arith.constant 0 : i32
    return %c0_i32, %c0_i32_0 : i32, i32
  }
  func.func @transform_8(%arg0: i32) -> (i32, i32, i32) {
    %c0_i32 = arith.constant 0 : i32
    %c0_i32_0 = arith.constant 0 : i32
    %c0_i32_1 = arith.constant 0 : i32
    return %arg0, %c0_i32, %c0_i32_0 : i32, i32, i32
  }
  func.func @transform_9(%arg0: i32) -> (i32, i32, i32) {
    %c0_i32 = arith.constant 0 : i32
    %c0_i32_0 = arith.constant 0 : i32
    %c0_i32_1 = arith.constant 0 : i32
    %c0_i32_2 = arith.constant 0 : i32
    return %c0_i32, %c0_i32_0, %c0_i32_1 : i32, i32, i32
  }
}

</mosaic_0001>

<bundles_post_ra>
// kernel: encoder_forward.1
= control target key start
LH: loop header
LB: loop body
LE: loop exit
PB: predicated region body
PF: predicated region fallthrough
CT: control target
= control target key end

     0   :  { %s2435_s30 = smov 0   ;;  %s3236_s0 = inlined_call_operand.vmem [shape: bf16[2,64,128], index: 0, kind: input, shape index: {}, may-alias: {0,1}]   ;;  %s3237_s1 = inlined_call_operand.vmem [shape: bf16[2,64,128], index: 1, kind: input, shape index: {}, may-alias: {0,1}]   ;;  %s3238_s2 = inlined_call_operand.vmem [shape: bf16[128,192], index: 2, kind: input, shape index: {}]   ;;  %s3239_s3 = inlined_call_operand.vmem [shape: bf16[128,192], index: 3, kind: input, shape index: {}]   ;;  %s3240_s4 = inlined_call_operand.vmem [shape: bf16[64,192], index: 4, kind: input, shape index: {}]   ;;  %s3241_s5 = inlined_call_operand.vmem [shape: bf16[64,192], index: 5, kind: input, shape index: {}]   ;;  %s3242_s6 = inlined_call_operand.vmem [shape: f32[1,384], index: 6, kind: input, shape index: {}]   ;;  %s3243_s7 = inlined_call_operand.vmem [shape: f32[1,128], index: 7, kind: input, shape index: {}]   ;;  %s3244_s8 = inlined_call_operand.vmem [shape: f32[8,16,128], index: 8, kind: output, shape index: {0}]   ;;  %s3245_s9 = inlined_call_operand.vmem [shape: f32[2,16,64], index: 9, kind: output, shape index: {1}]  }
   0x1 LB: > { %s2441_s10 = sadd.s32 4294967295, %s2381_s30   ;;  %p1932_p0 = scmp.ge.s32.totalorder %s2381_s30, 1  ;;  %s2381_s30 = sphi %s2435_s30, %s20_s30  }
   0x2   : > { %p299_p1 = scmp.lt.s32.totalorder %s2381_s30, 3 }
   0x4   : > { %p300_p2 = pnand %p1932_p0, %p299_p1 }
   0x5   : > { %p342_p3 = scmp.lt.s32.totalorder (!%p300_p2), %s2441_s10, 1  ;;  %s347_s11 = ssub.s32 (!%p300_p2), 1, %s2441_s10 }
   0x6   : > { %303 = sbr.rel (%p300_p2) target bundleno = 1771 (0x6eb), region = 52  ;;  %p348_p4 = scmp.lt.s32.totalorder (!%p300_p2), %s347_s11, 1 }
   0x7   : > { %s1937_s12 = sshll.u32 (!%p300_p2), %s2441_s10, 2  ;;  %p1940_p6 = scmp.ne.s32.totalorder (!%p300_p2), %s2441_s10, 0 }
   0x8   : > { %p355_p5 = scmp.lt.s32.totalorder (!%p300_p2), %s1937_s12, 7 }
   0xb   : > { %s343_s13 = scalar_select %p342_p3, %s2441_s10, 1 }
   0xc   : > { %s3253_s11 = smov (!%p348_p4, %s347_s11), 1  ;;  %s3255_s12 = smov (!%p355_p5, %s1937_s12), 7 }
   0xd   : > { %s2208_s14 = sshll.u32 %s343_s13, 5  ;;  %s2209_s18 = sshll.u32 %s3253_s11, 5 }
   0xe   : > { %s2452_s17 = scalar_lea.vmem %s3236_s0, %s2208_s14  ;;  %s2457_s21 = scalar_lea.vmem %s3237_s1, %s2209_s18 }
   0xf   : > { %s2210_s22 = sshll.u32 %s3255_s12, 4  ;;  %365 = sbr.rel (%p1940_p6) target bundleno = 25 (0x19), region = 56 }
  0x10   : > { %s2462_s25 = scalar_lea.vmem %s3244_s8, %s2210_s22 }
  0x14   : > { %vm366_vm0 = vcmask 523264   ;;  %v2383_v0 = vmov 0.0  }
  0x15   : > { %367 = vst.msk [vmem:[#allocation4] sm:$0xff] %vm366_vm0, %v2383_v0 }
  0x16   : > { %368 = vst.msk [vmem:[#allocation4 + $0x8] sm:$0xff] %vm366_vm0, %v2383_v0 }
  0x17   : > { %369 = vst.msk [vmem:[#allocation4 + $0x10] sm:$0xff] %vm366_vm0, %v2383_v0 }
  0x18   : > { %370 = vst.msk [vmem:[#allocation4 + $0x18] sm:$0xff] %vm366_vm0, %v2383_v0 }
  0x19 PF: > { %v2015_v1 = vld [vmem:[%s3238_s2 + $0x70] sm:$0xf]  ;;  %v2230_v2 = vld [vmem:[%s3238_s2 + $0x74] sm:$0xf0]  ;;  %v2249_v6 = vld [vmem:[%s3239_s3 + $0x74] sm:$0xf] }
  0x1a   : > { %v2095_v3 = vld [vmem:[%s3239_s3 + $0x70] sm:$0xf]  ;;  %v2016_v4 = vor.u32 %v2230_v2, %v2015_v1  ;;  %v2250_v5 = vld [vmem:[%s3239_s3 + $0x74] sm:$0xf0]  ;;  %v2097_v7 = vld [vmem:[%s3239_s3 + $0x78] sm:$0xf0] }
  0x1b   : > { %v2096_v8 = vor.u32 %v2250_v5, %v2095_v3  ;;  %v2100_v9 = vor.u32 %v2249_v6, %v2097_v7  ;;  %v2007_v10 = vld [vmem:[%s3238_s2 + $0x60] sm:$0xf]  ;;  %v2228_v11 = vld [vmem:[%s3238_s2 + $0x64] sm:$0xf0]  ;;  %v2247_v15 = vld [vmem:[%s3239_s3 + $0x64] sm:$0xf] }
  0x1c   : > { %v2087_v12 = vld [vmem:[%s3239_s3 + $0x60] sm:$0xf]  ;;  %499 = vmatpush.bf16.msra.mxu0 %v2016_v4  ;;  %v2008_v13 = vor.u32 %v2228_v11, %v2007_v10  ;;  %v2248_v14 = vld [vmem:[%s3239_s3 + $0x64] sm:$0xf0]  ;;  %v2089_v16 = vld [vmem:[%s3239_s3 + $0x68] sm:$0xf0] }
  0x1d   : > { %704 = vmatpush.bf16.msra.mxu2 %v2096_v8  ;;  %733 = vmatpush.bf16.msra.mxu3 %v2100_v9  ;;  %v2088_v17 = vor.u32 %v2248_v14, %v2087_v12  ;;  %v2092_v18 = vor.u32 %v2247_v15, %v2089_v16  ;;  %v2229_v19 = vld [vmem:[%s3238_s2 + $0x74] sm:$0xf]  ;;  %v2017_v20 = vld [vmem:[%s3238_s2 + $0x78] sm:$0xf0]  ;;  %v1999_v21 = vld [vmem:[%s3238_s2 + $0x50] sm:$0xf] }
  0x1e   : > { %v2020_v22 = vor.u32 %v2229_v19, %v2017_v20  ;;  %v2226_v23 = vld [vmem:[%s3238_s2 + $0x54] sm:$0xf0]  ;;  %v2079_v24 = vld [vmem:[%s3239_s3 + $0x50] sm:$0xf]  ;;  %v2245_v26 = vld [vmem:[%s3239_s3 + $0x54] sm:$0xf] }
  0x1f   : > { %v2246_v25 = vld [vmem:[%s3239_s3 + $0x54] sm:$0xf0]  ;;  %v2081_v27 = vld [vmem:[%s3239_s3 + $0x58] sm:$0xf0]  ;;  %v2227_v28 = vld [vmem:[%s3238_s2 + $0x64] sm:$0xf]  ;;  %v2000_v29 = vor.u32 %v2226_v23, %v1999_v21 }
  0x20   : > { %500 = vmatpush.bf16.msra.mxu0 %v2008_v13  ;;  %528 = vmatpush.bf16.msra.mxu1 %v2020_v22  ;;  %v2009_v30 = vld [vmem:[%s3238_s2 + $0x68] sm:$0xf0]  ;;  %v1991_v31 = vld [vmem:[%s3238_s2 + $0x40] sm:$0xf]  ;;  %v2224_v32 = vld [vmem:[%s3238_s2 + $0x44] sm:$0xf0]  ;;  %v2080_v33 = vor.u32 %v2246_v25, %v2079_v24  ;;  %v2084_v34 = vor.u32 %v2245_v26, %v2081_v27 }
  0x21   : > { %705 = vmatpush.bf16.msra.mxu2 %v2088_v17  ;;  %734 = vmatpush.bf16.msra.mxu3 %v2092_v18  ;;  %v2012_v35 = vor.u32 %v2227_v28, %v2009_v30  ;;  %v2071_v36 = vld [vmem:[%s3239_s3 + $0x40] sm:$0xf]  ;;  %v2244_v37 = vld [vmem:[%s3239_s3 + $0x44] sm:$0xf0]  ;;  %v2243_v38 = vld [vmem:[%s3239_s3 + $0x44] sm:$0xf]  ;;  %v1992_v42 = vor.u32 %v2224_v32, %v1991_v31 }
  0x22   : > { %v2073_v39 = vld [vmem:[%s3239_s3 + $0x48] sm:$0xf0]  ;;  %v2225_v40 = vld [vmem:[%s3238_s2 + $0x54] sm:$0xf]  ;;  %v2001_v41 = vld [vmem:[%s3238_s2 + $0x58] sm:$0xf0]  ;;  %v2072_v46 = vor.u32 %v2244_v37, %v2071_v36 }
  0x23   : > { %v2004_v43 = vor.u32 %v2225_v40, %v2001_v41  ;;  %v1983_v44 = vld [vmem:[%s3238_s2 + $0x30] sm:$0xf]  ;;  %v2222_v45 = vld [vmem:[%s3238_s2 + $0x34] sm:$0xf0]  ;;  %v2076_v47 = vor.u32 %v2243_v38, %v2073_v39  ;;  %v2223_v49 = vld [vmem:[%s3238_s2 + $0x44] sm:$0xf] }
  0x24   : > { %501 = vmatpush.bf16.msra.mxu0 %v2000_v29  ;;  %529 = vmatpush.bf16.msra.mxu1 %v2012_v35  ;;  %v2063_v48 = vld [vmem:[%s3239_s3 + $0x30] sm:$0xf]  ;;  %v1993_v50 = vld [vmem:[%s3238_s2 + $0x48] sm:$0xf0]  ;;  %v2242_v51 = vld [vmem:[%s3239_s3 + $0x34] sm:$0xf0]  ;;  %v1984_v54 = vor.u32 %v2222_v45, %v1983_v44 }
  0x25   : > { %706 = vmatpush.bf16.msra.mxu2 %v2080_v33  ;;  %735 = vmatpush.bf16.msra.mxu3 %v2084_v34  ;;  %v2241_v52 = vld [vmem:[%s3239_s3 + $0x34] sm:$0xf]  ;;  %v2065_v53 = vld [vmem:[%s3239_s3 + $0x38] sm:$0xf0]  ;;  %v1996_v55 = vor.u32 %v2223_v49, %v1993_v50  ;;  %v1975_v56 = vld [vmem:[%s3238_s2 + $0x20] sm:$0xf]  ;;  %v2064_v58 = vor.u32 %v2242_v51, %v2063_v48 }
  0x26   : > { %v2220_v57 = vld [vmem:[%s3238_s2 + $0x24] sm:$0xf0]  ;;  %v2068_v59 = vor.u32 %v2241_v52, %v2065_v53  ;;  %v2055_v60 = vld [vmem:[%s3239_s3 + $0x20] sm:$0xf]  ;;  %v2221_v61 = vld [vmem:[%s3238_s2 + $0x34] sm:$0xf] }
  0x27   : > { %v1985_v62 = vld [vmem:[%s3238_s2 + $0x38] sm:$0xf0]  ;;  %v2240_v63 = vld [vmem:[%s3239_s3 + $0x24] sm:$0xf0]  ;;  %v2239_v0 = vld [vmem:[%s3239_s3 + $0x24] sm:$0xf]  ;;  %v1976_v2 = vor.u32 %v2220_v57, %v1975_v56 }
  0x28   : > { %502 = vmatpush.bf16.msra.mxu0 %v1992_v42  ;;  %530 = vmatpush.bf16.msra.mxu1 %v2004_v43  ;;  %v2057_v1 = vld [vmem:[%s3239_s3 + $0x28] sm:$0xf0]  ;;  %v1988_v3 = vor.u32 %v2221_v61, %v1985_v62  ;;  %v1967_v4 = vld [vmem:[%s3238_s2 + $0x10] sm:$0xf]  ;;  %v2218_v5 = vld [vmem:[%s3238_s2 + $0x14] sm:$0xf0]  ;;  %v2056_v6 = vor.u32 %v2240_v63, %v2055_v60 }
  0x29   : > { %707 = vmatpush.bf16.msra.mxu2 %v2072_v46  ;;  %736 = vmatpush.bf16.msra.mxu3 %v2076_v47  ;;  %v2060_v7 = vor.u32 %v2239_v0, %v2057_v1  ;;  %v2047_v8 = vld [vmem:[%s3239_s3 + $0x10] sm:$0xf]  ;;  %v2219_v9 = vld [vmem:[%s3238_s2 + $0x24] sm:$0xf]  ;;  %v1977_v10 = vld [vmem:[%s3238_s2 + $0x28] sm:$0xf0]  ;;  %v1968_v16 = vor.u32 %v2218_v5, %v1967_v4 }
  0x2a   : > { %v2238_v11 = vld [vmem:[%s3239_s3 + $0x14] sm:$0xf0]  ;;  %v2237_v12 = vld [vmem:[%s3239_s3 + $0x14] sm:$0xf]  ;;  %v2049_v13 = vld [vmem:[%s3239_s3 + $0x18] sm:$0xf0]  ;;  %v1980_v17 = vor.u32 %v2219_v9, %v1977_v10 }
  0x2b   : > { %v1959_v14 = vld [vmem:[%s3238_s2] sm:$0xf]  ;;  %v2216_v15 = vld [vmem:[%s3238_s2 + $0x4] sm:$0xf0]  ;;  %v2235_v20 = vld [vmem:[%s3239_s3 + $0x4] sm:$0xf]  ;;  %v2048_v22 = vor.u32 %v2238_v11, %v2047_v8  ;;  %v2052_v23 = vor.u32 %v2237_v12, %v2049_v13 }
  0x2c   : > { %503 = vmatpush.bf16.msra.mxu0 %v1984_v54  ;;  %531 = vmatpush.bf16.msra.mxu1 %v1996_v55  ;;  %v2039_v18 = vld [vmem:[%s3239_s3] sm:$0xf]  ;;  %v2236_v19 = vld [vmem:[%s3239_s3 + $0x4] sm:$0xf0]  ;;  %v2041_v21 = vld [vmem:[%s3239_s3 + $0x8] sm:$0xf0]  ;;  %v1960_v31 = vor.u32 %v2216_v15, %v1959_v14 }
  0x2d   : > { %708 = vmatpush.bf16.msra.mxu2 %v2064_v58  ;;  %737 = vmatpush.bf16.msra.mxu3 %v2068_v59  ;;  %v2217_v24 = vld [vmem:[%s3238_s2 + $0x14] sm:$0xf]  ;;  %v1969_v25 = vld [vmem:[%s3238_s2 + $0x18] sm:$0xf0]  ;;  %v2161_v26 = vld [vmem:[%s3241_s5 + $0x30] sm:$0xf]  ;;  %v2040_v35 = vor.u32 %v2236_v19, %v2039_v18  ;;  %v2044_v36 = vor.u32 %v2235_v20, %v2041_v21 }
  0x2e   : > { %v2657_v27 = vld [vmem:[%s3243_s7] ss:$0 sm:$0xff]  ;;  %v2266_v28 = vld [vmem:[%s3241_s5 + $0x34] sm:$0xf0]  ;;  %v2127_v29 = vld [vmem:[%s3240_s4 + $0x30] sm:$0xf]  ;;  %v1972_v32 = vor.u32 %v2217_v24, %v1969_v25 }
  0x2f   : > { %v2258_v30 = vld [vmem:[%s3240_s4 + $0x34] sm:$0xf0]  ;;  %v2265_v33 = vld [vmem:[%s3241_s5 + $0x34] sm:$0xf]  ;;  %v2163_v34 = vld [vmem:[%s3241_s5 + $0x38] sm:$0xf0]  ;;  %v2675_v38 = vor.u32 %v2266_v28, %v2161_v26 }
  0x30   : > { %504 = vmatpush.bf16.msra.mxu0 %v1976_v2  ;;  %532 = vmatpush.bf16.msra.mxu1 %v1988_v3  ;;  %v2211_v37 = vld [vmem:[%s2452_s17] sm:$0xff]  ;;  %v1961_v40 = vld [vmem:[%s3238_s2 + $0x8] sm:$0xf0]  ;;  %v2683_v41 = vor.u32 %v2258_v30, %v2127_v29  ;;  %s2384_s26 = smov 64   ;;  %v2264_v43 = vld [vmem:[%s3241_s5 + $0x24] sm:$0xf0]  ;;  %v2699_v46 = vor.u32 %v2265_v33, %v2163_v34 }
  0x31   : > { %709 = vmatpush.bf16.msra.mxu2 %v2056_v6  ;;  %738 = vmatpush.bf16.msra.mxu3 %v2060_v7  ;;  %v2215_v39 = vld [vmem:[%s3238_s2 + $0x4] sm:$0xf]  ;;  %v2153_v42 = vld [vmem:[%s3241_s5 + $0x20] sm:$0xf]  ;;  %v2256_v45 = vld [vmem:[%s3240_s4 + $0x24] sm:$0xf0] }
  0x32   : > { %1071 = vrot.lane.b32.xlu1 %v2657_v27, %s2384_s26  ;;  %v2119_v44 = vld [vmem:[%s3240_s4 + $0x20] sm:$0xf]  ;;  %v1964_v48 = vor.u32 %v2215_v39, %v1961_v40  ;;  %v2704_v49 = vor.u32 %v2264_v43, %v2153_v42  ;;  %v2145_v51 = vld [vmem:[%s3241_s5 + $0x10] sm:$0xf]  ;;  %v2262_v52 = vld [vmem:[%s3241_s5 + $0x14] sm:$0xf0] }
  0x33   : > { %v2231_v47 = vld [vmem:[%s2457_s21] sm:$0xff]  ;;  %v2706_v50 = vor.u32 %v2256_v45, %v2119_v44  ;;  %v2717_v53 = vor.u32 %v2262_v52, %v2145_v51  ;;  %v2257_v54 = vld [vmem:[%s3240_s4 + $0x34] sm:$0xf]  ;;  %v2129_v55 = vld [vmem:[%s3240_s4 + $0x38] sm:$0xf0]  ;;  %vm872_vm1 = vcmask 523264  }
  0x34   : > { %505 = vmatpush.bf16.msra.mxu0 %v1968_v16  ;;  %533 = vmatpush.bf16.msra.mxu1 %v1980_v17  ;;  %v2111_v56 = vld [vmem:[%s3240_s4 + $0x10] sm:$0xf]  ;;  %v2728_v57 = vor.u32 %v2257_v54, %v2129_v55  ;;  %v2254_v58 = vld [vmem:[%s3240_s4 + $0x14] sm:$0xf0]  ;;  %v2263_v59 = vld [vmem:[%s3241_s5 + $0x24] sm:$0xf] }
  0x35   : > { %710 = vmatpush.bf16.msra.mxu2 %v2048_v22  ;;  %739 = vmatpush.bf16.msra.mxu3 %v2052_v23  ;;  %v2155_v60 = vld [vmem:[%s3241_s5 + $0x28] sm:$0xf0]  ;;  %v2740_v61 = vor.u32 %v2254_v58, %v2111_v56  ;;  %v2137_v1 = vld [vmem:[%s3241_s5] sm:$0xf]  ;;  %v2260_v2 = vld [vmem:[%s3241_s5 + $0x4] sm:$0xf0] }
  0x36   : > { %v2742_v62 = vor.u32 %v2263_v59, %v2155_v60  ;;  %v2212_v63 = vld [vmem:[%s2452_s17 + $0x8] sm:$0xff]  ;;  %v2755_v3 = vor.u32 %v2260_v2, %v2137_v1  ;;  %v2261_v4 = vld [vmem:[%s3241_s5 + $0x14] sm:$0xf]  ;;  %v2147_v5 = vld [vmem:[%s3241_s5 + $0x18] sm:$0xf0]  ;;  %vm565_vm2 = vcmask 1043456  }
  0x37   : > { %v2232_v0 = vld [vmem:[%s2457_s21 + $0x8] sm:$0xff]  ;;  %v2255_v6 = vld [vmem:[%s3240_s4 + $0x24] sm:$0xf]  ;;  %v2768_v7 = vor.u32 %v2261_v4, %v2147_v5  ;;  %v2103_v9 = vld [vmem:[%s3240_s4] sm:$0xf]  ;;  %vm566_vm3 = vcmask 523268  }
  0x38   : > { %506 = vmatpush.bf16.msra.mxu0 %v1960_v31  ;;  %534 = vmatpush.bf16.msra.mxu1 %v1972_v32  ;;  %v2121_v8 = vld [vmem:[%s3240_s4 + $0x28] sm:$0xf0]  ;;  %v2252_v10 = vld [vmem:[%s3240_s4 + $0x4] sm:$0xf0]  ;;  %v2259_v13 = vld [vmem:[%s3241_s5 + $0x4] sm:$0xf] }
  0x39   : > { %711 = vmatpush.bf16.msra.mxu2 %v2040_v35  ;;  %740 = vmatpush.bf16.msra.mxu3 %v2044_v36  ;;  %v2779_v11 = vor.u32 %v2255_v6, %v2121_v8  ;;  %v2781_v12 = vor.u32 %v2252_v10, %v2103_v9  ;;  %v2139_v14 = vld [vmem:[%s3241_s5 + $0x8] sm:$0xf0]  ;;  %v800_v15 = vld [vmem:[%s3242_s6 + $0x1] sm:$0x3]  ;;  %v2213_v18 = vld [vmem:[%s2452_s17 + $0x10] sm:$0xff]  ;;  %p2203_p7 = scmp.ne.s32.totalorder %s2441_s10, 1 }
  0x3a   : > { %v2793_v16 = vor.u32 %v2259_v13, %v2139_v14  ;;  %v802_v17 = vperm.slane %v800_v15, 0  ;;  %v2233_v19 = vld [vmem:[%s2457_s21 + $0x10] sm:$0xff]  ;;  %v803_v20 = vperm.slane %v800_v15, 1  ;;  %v2113_v22 = vld [vmem:[%s3240_s4 + $0x18] sm:$0xf0]  ;;  %v808_v31 = vld [vmem:[#allocation4] sm:$0xff] }
  0x3b   : > { %507 = vmatmul.bf16.vlgmr.msra.gmra.mxu0 %v2211_v37  ;;  %v2253_v21 = vld [vmem:[%s3240_s4 + $0x14] sm:$0xf]  ;;  %v2251_v23 = vld [vmem:[%s3240_s4 + $0x4] sm:$0xf]  ;;  %v2105_v25 = vld [vmem:[%s3240_s4 + $0x8] sm:$0xf0] }
  0x3c   : > { %880 = vmatpush.bf16.msrb.mxu0 %v2683_v41  ;;  %712 = vmatmul.bf16.vlgmr.msra.gmra.mxu2 %v2231_v47  ;;  %v2816_v24 = vor.u32 %v2253_v21, %v2113_v22  ;;  %v2825_v26 = vor.u32 %v2251_v23, %v2105_v25  ;;  %v812_v28 = vld [vmem:[#allocation4 + $0x18] sm:$0xff]  ;;  %v2839_v32 = vld [vmem:[#allocation4 + $0x8] sm:$0xff]  ;;  %v2841_v33 = vld [vmem:[#allocation4 + $0x10] sm:$0xff] }
  0x3d   : > { %959 = vmatpush.bf16.msrb.mxu2 %v2675_v38  ;;  %973 = vmatpush.bf16.msrb.mxu3 %v2699_v46  ;;  %v2214_v29 = vld [vmem:[%s2452_s17 + $0x18] sm:$0xff]  ;;  %v831_v34 = vpack.c.bf16 %v2839_v32, %v808_v31  ;;  %v904_v35 = vpack.c.bf16 %v812_v28, %v2841_v33  ;;  %vm2865_vm4 = vmor %vm566_vm3, %vm565_vm2 }
  0x3e   : > { %741 = vmatmul.bf16.vlgmr.msra.gmra.mxu3 %v2231_v47  ;;  %535 = vmatpush.bf16.msra.mxu1 %v1964_v48  ;;  %v2234_v30 = vld [vmem:[%s2457_s21 + $0x18] sm:$0xff] }
  0x3f   : > { %945 = vrot.lane.b32.xlu0 %v802_v17, %s2384_s26 }
  0x40   : > { %881 = vmatpush.bf16.msrb.mxu0 %v2706_v50 }
  0x41   : > { %960 = vmatpush.bf16.msrb.mxu2 %v2704_v49  ;;  %536 = vmatmul.bf16.vlgmr.msra.gmra.mxu1 %v2211_v37 }
  0x42   : > { %894 = vmatpush.bf16.msrb.mxu1 %v2728_v57  ;;  %974 = vmatpush.bf16.msrb.mxu3 %v2742_v62 }
  0x44   : > { %882 = vmatpush.bf16.msrb.mxu0 %v2740_v61 }
  0x45   : > { %961 = vmatpush.bf16.msrb.mxu2 %v2717_v53 }
  0x46   : > { %975 = vmatpush.bf16.msrb.mxu3 %v2768_v7  ;;  %895 = vmatpush.bf16.msrb.mxu1 %v2779_v11 }
  0x47   : > { %947 = vrot.lane.b32.xlu0 %v803_v20, %s2384_s26 }
  0x48   : > { %883 = vmatpush.bf16.msrb.mxu0 %v2781_v12 }
  0x49   : > { %962 = vmatpush.bf16.msrb.mxu2 %v2755_v3 }
  0x4a   : > { %976 = vmatpush.bf16.msrb.mxu3 %v2793_v16  ;;  %896 = vmatpush.bf16.msrb.mxu1 %v2816_v24 }
  0x4b   : > { %512 = vmatmul.bf16.gmra.mxu0 %v2212_v63 }
  0x4c   : > { %717 = vmatmul.bf16.gmra.mxu2 %v2232_v0  ;;  %1171 = vmatpush.bf16.msra.mxu0 %v2683_v41 }
  0x4d   : > { %1206 = vmatpush.bf16.msra.mxu2 %v2675_v38 }
  0x4e   : > { %746 = vmatmul.bf16.gmra.mxu3 %v2232_v0  ;;  %897 = vmatpush.bf16.msrb.mxu1 %v2825_v26 }
  0x4f   : > { %1220 = vmatpush.bf16.msra.mxu3 %v2699_v46  ;;  %1122 = vrot.lane.b32.xlu0 %v812_v28, %s2384_s26 }
  0x50   : > { %1172 = vmatpush.bf16.msra.mxu0 %v2706_v50 }
  0x51   : > { %541 = vmatmul.bf16.gmra.mxu1 %v2212_v63  ;;  %1207 = vmatpush.bf16.msra.mxu2 %v2704_v49 }
  0x52   : > { %1185 = vmatpush.bf16.msra.mxu1 %v2728_v57 }
  0x53   : > { %1221 = vmatpush.bf16.msra.mxu3 %v2742_v62 }
  0x54   : > { %1173 = vmatpush.bf16.msra.mxu0 %v2740_v61 }
  0x55   : > { %1208 = vmatpush.bf16.msra.mxu2 %v2717_v53 }
  0x56   : > { %1186 = vmatpush.bf16.msra.mxu1 %v2779_v11 }
  0x57   : > { %1222 = vmatpush.bf16.msra.mxu3 %v2768_v7  ;;  %1096 = vrot.lane.b32.xlu0 %v808_v31, %s2384_s26 }
  0x58   : > { %1174 = vmatpush.bf16.msra.mxu0 %v2781_v12 }
  0x59   : > { %1209 = vmatpush.bf16.msra.mxu2 %v2755_v3 }
  0x5a   : > { %1187 = vmatpush.bf16.msra.mxu1 %v2816_v24 }
  0x5b   : > { %517 = vmatmul.bf16.gmra.mxu0 %v2213_v18  ;;  %1223 = vmatpush.bf16.msra.mxu3 %v2793_v16 }
  0x5c   : > { %722 = vmatmul.bf16.gmra.mxu2 %v2233_v19 }
  0x5e   : > { %751 = vmatmul.bf16.gmra.mxu3 %v2233_v19  ;;  %1188 = vmatpush.bf16.msra.mxu1 %v2825_v26 }
  0x61   : > { %546 = vmatmul.bf16.gmra.mxu1 %v2213_v18 }
  0x6b   : > { %522 = vmatmul.bf16.gmra.mxu0 %v2214_v29 }
  0x6c   : > { %727 = vmatmul.bf16.gmra.mxu2 %v2234_v30 }
  0x6e   : > { %756 = vmatmul.bf16.gmra.mxu3 %v2234_v30 }
  0x71   : > { %551 = vmatmul.bf16.gmra.mxu1 %v2214_v29 }
  0x7b   : > { %2133 = vmatmul.msk.bf16.vlgmr.msrb.gmra.mxu0 %vm872_vm1, %v831_v34 }
  0x7c   : > { %2167 = vmatmul.msk.bf16.vlgmr.msrb.gmra.mxu2 %vm872_vm1, %v904_v35  ;;  %1398 = vmatpush.bf16.msrb.mxu0 %v2683_v41 }
  0x7d   : > { %1433 = vmatpush.bf16.msrb.mxu2 %v2675_v38 }
  0x7e   : > { %2168 = vmatmul.msk.bf16.vlgmr.msrb.gmra.mxu3 %vm872_vm1, %v904_v35 }
  0x7f   : > { %1447 = vmatpush.bf16.msrb.mxu3 %v2699_v46 }
  0x80   : > { %1399 = vmatpush.bf16.msrb.mxu0 %v2706_v50 }
  0x81   : > { %2134 = vmatmul.msk.bf16.vlgmr.msrb.gmra.mxu1 %vm872_vm1, %v831_v34  ;;  %1434 = vmatpush.bf16.msrb.mxu2 %v2704_v49 }
  0x82   : > { %1412 = vmatpush.bf16.msrb.mxu1 %v2728_v57 }
  0x83   : > { %1448 = vmatpush.bf16.msrb.mxu3 %v2742_v62 }
  0x84   : > { %1400 = vmatpush.bf16.msrb.mxu0 %v2740_v61 }
  0x85   : > { %1435 = vmatpush.bf16.msrb.mxu2 %v2717_v53 }
  0x86   : > { %1413 = vmatpush.bf16.msrb.mxu1 %v2779_v11 }
  0x87   : > { %1449 = vmatpush.bf16.msrb.mxu3 %v2768_v7 }
  0x88   : > { %1401 = vmatpush.bf16.msrb.mxu0 %v2781_v12 }
  0x89   : > { %1436 = vmatpush.bf16.msrb.mxu2 %v2755_v3 }
  0x8a   : > { %1414 = vmatpush.bf16.msrb.mxu1 %v2816_v24 }
  0x8b   : > { %1450 = vmatpush.bf16.msrb.mxu3 %v2793_v16 }
  0x8e   : > { %1415 = vmatpush.bf16.msrb.mxu1 %v2825_v26 }
  0xb1   : > { %v946_v35 = vpop.permute.xlu0 %945 }
  0xb8   : > { %v508_v36 = vpop.f32.mrf.mxu0 }
  0xbe   : > { %v537_v37 = vpop.f32.mrf.mxu1 }
  0xbf   : > { %v557_v39 = vpack.c.bf16 %v537_v37, %v508_v36  ;;  %v713_v42 = vpop.f32.mrf.mxu2  ;;  %v2900_v36 = vld [vmem:[%s3242_s6] sm:$0x3] }
  0xc0   : > { %v510_v45 = vpop.f32.mrf.mxu0 }
  0xc1   : > { %v742_v43 = vpop.f32.mrf.mxu3  ;;  %568 = vst.msk [vmem:[#allocation2] sm:$0xff] %vm2865_vm4, %v557_v39  ;;  %v2903_v39 = vperm.slane %v2900_v36, 0 }
  0xc2   : > { %v762_v44 = vpack.c.bf16 %v742_v43, %v713_v42 }
  0xc4   : > { %770 = vst.msk [vmem:[#allocation3] sm:$0xff] %vm2865_vm4, %v762_v44 }
  0xc6   : > { %v539_v47 = vpop.f32.mrf.mxu1 }
  0xc7   : > { %v558_v48 = vpack.c.bf16 %v539_v47, %v510_v45  ;;  %v715_v51 = vpop.f32.mrf.mxu2 }
  0xc8   : > { %v513_v55 = vpop.f32.mrf.mxu0  ;;  %v2905_v43 = vld [vmem:[#allocation2] sm:$0xff] }
  0xc9   : > { %v744_v52 = vpop.f32.mrf.mxu3  ;;  %569 = vst.msk [vmem:[#allocation2 + $0x8] sm:$0xff] %vm2865_vm4, %v558_v48 }
  0xca   : > { %v763_v54 = vpack.c.bf16 %v744_v52, %v715_v51  ;;  %v818_v51 = vunpack.c.l.bf16 %v2905_v43 }
  0xcc   : > { %771 = vst.msk [vmem:[#allocation3 + $0x8] sm:$0xff] %vm2865_vm4, %v763_v54 }
  0xce   : > { %v542_v56 = vpop.f32.mrf.mxu1 }
  0xcf   : > { %v559_v58 = vpack.c.bf16 %v542_v56, %v513_v55  ;;  %v718_v59 = vpop.f32.mrf.mxu2  ;;  %v2913_v55 = vpop.permute.xlu0 %947 }
  0xd0   : > { %v515_v0 = vpop.f32.mrf.mxu0 }
  0xd1   : > { %v747_v60 = vpop.f32.mrf.mxu3  ;;  %570 = vst.msk [vmem:[#allocation2 + $0x10] sm:$0xff] %vm2865_vm4, %v559_v58 }
  0xd2   : > { %v764_v63 = vpack.c.bf16 %v747_v60, %v718_v59  ;;  %v2917_v59 = vld [vmem:[#allocation2 + $0x8] sm:$0xff]  ;;  %v2921_v60 = vsel %vm872_vm1, %v946_v35, %v2913_v55 }
  0xd4   : > { %772 = vst.msk [vmem:[#allocation3 + $0x10] sm:$0xff] %vm2865_vm4, %v764_v63 }
  0xd6   : > { %v544_v1 = vpop.f32.mrf.mxu1 }
  0xd7   : > { %v560_v2 = vpack.c.bf16 %v544_v1, %v515_v0  ;;  %v720_v4 = vpop.f32.mrf.mxu2 }
  0xd8   : > { %v518_v8 = vpop.f32.mrf.mxu0 }
  0xd9   : > { %v749_v5 = vpop.f32.mrf.mxu3  ;;  %571 = vst.msk [vmem:[#allocation2 + $0x18] sm:$0xff] %vm2865_vm4, %v560_v2  ;;  %v820_v2 = vunpack.c.l.bf16 %v2917_v59 }
  0xda   : > { %v765_v6 = vpack.c.bf16 %v749_v5, %v720_v4 }
  0xdc   : > { %773 = vst.msk [vmem:[#allocation3 + $0x18] sm:$0xff] %vm2865_vm4, %v765_v6 }
  0xde   : > { %v547_v9 = vpop.f32.mrf.mxu1 }
  0xdf   : > { %v561_v10 = vpack.c.bf16 %v547_v9, %v518_v8  ;;  %v723_v13 = vpop.f32.mrf.mxu2 }
  0xe0   : > { %v520_v17 = vpop.f32.mrf.mxu0 }
  0xe1   : > { %v752_v14 = vpop.f32.mrf.mxu3  ;;  %572 = vst.msk [vmem:[#allocation2 + $0x20] sm:$0xff] %vm2865_vm4, %v561_v10 }
  0xe2   : > { %v766_v15 = vpack.c.bf16 %v752_v14, %v723_v13 }
  0xe4   : > { %774 = vst.msk [vmem:[#allocation3 + $0x20] sm:$0xff] %vm2865_vm4, %v766_v15 }
  0xe6   : > { %v549_v18 = vpop.f32.mrf.mxu1 }
  0xe7   : > { %v562_v19 = vpack.c.bf16 %v549_v18, %v520_v17  ;;  %v725_v20 = vpop.f32.mrf.mxu2 }
  0xe8   : > { %v523_v23 = vpop.f32.mrf.mxu0 }
  0xe9   : > { %v754_v21 = vpop.f32.mrf.mxu3  ;;  %573 = vst.msk [vmem:[#allocation2 + $0x28] sm:$0xff] %vm2865_vm4, %v562_v19 }
  0xea   : > { %v767_v22 = vpack.c.bf16 %v754_v21, %v725_v20 }
  0xec   : > { %775 = vst.msk [vmem:[#allocation3 + $0x28] sm:$0xff] %vm2865_vm4, %v767_v22 }
  0xee   : > { %v552_v25 = vpop.f32.mrf.mxu1 }
  0xef   : > { %v563_v28 = vpack.c.bf16 %v552_v25, %v523_v23  ;;  %v728_v29 = vpop.f32.mrf.mxu2 }
  0xf0   : > { %v525_v34 = vpop.f32.mrf.mxu0 }
  0xf1   : > { %v757_v30 = vpop.f32.mrf.mxu3  ;;  %574 = vst.msk [vmem:[#allocation2 + $0x30] sm:$0xff] %vm2865_vm4, %v563_v28 }
  0xf2   : > { %v768_v31 = vpack.c.bf16 %v757_v30, %v728_v29 }
  0xf4   : > { %776 = vst.msk [vmem:[#allocation3 + $0x30] sm:$0xff] %vm2865_vm4, %v768_v31 }
  0xf6   : > { %v554_v37 = vpop.f32.mrf.mxu1 }
  0xf7   : > { %v564_v42 = vpack.c.bf16 %v554_v37, %v525_v34  ;;  %v730_v44 = vpop.f32.mrf.mxu2 }
  0xf8   : > { %v885_v48 = vpop.f32.mrf.mxu0 }
  0xf9   : > { %v759_v45 = vpop.f32.mrf.mxu3  ;;  %575 = vst.msk [vmem:[#allocation2 + $0x38] sm:$0xff] %vm2865_vm4, %v564_v42  ;;  %v886_v52 = vadd.f32 %v885_v48, %v2903_v39 }
  0xfa   : > { %v769_v47 = vpack.c.bf16 %v759_v45, %v730_v44 }
  0xfb   : > { %v983_v54 = vadd.f32 %v886_v52, %v818_v51  ;;  %v2915_v58 = vld [vmem:[#allocation3 + $0x30] sm:$0xff] }
  0xfc   : > { %777 = vst.msk [vmem:[#allocation3 + $0x38] sm:$0xff] %vm2865_vm4, %v769_v47  ;;  %v827_v0 = vunpack.c.l.bf16 %v2915_v58 }
  0xfd   : > { %v2169_v56 = vmul.f32 -1.442695, %v983_v54 }
  0xff   : > { %2278 = vpow2.f32 %v2169_v56  ;;  %v964_v63 = vpop.f32.mrf.mxu2 }
 0x100   : > { %v965_v1 = vadd.f32 %v964_v63, %v2921_v60  ;;  %v887_v40 = vpop.f32.mrf.mxu0  ;;  %v2937_v63 = vperm.slane %v2900_v36, 1 }
 0x101   : > { %v888_v4 = vadd.f32 %v887_v40, %v2903_v39  ;;  %v978_v45 = vpop.f32.mrf.mxu3 }
 0x102   : > { %v1031_v5 = vadd.f32 %v965_v1, %v827_v0  ;;  %v828_v1 = vunpack.c.h.bf16 %v2915_v58 }
 0x103   : > { %v984_v6 = vadd.f32 %v888_v4, %v820_v2  ;;  %v2927_v13 = vld [vmem:[#allocation3 + $0x38] sm:$0xff]  ;;  %v899_v2 = vpop.f32.mrf.mxu1 }
 0x104   : > { %v2171_v8 = vmul.f32 -1.442695, %v1031_v5  ;;  %v829_v17 = vunpack.c.l.bf16 %v2927_v13 }
 0x105   : > { %v2279_v9 = vpop.eup %2278  ;;  %v2170_v10 = vmul.f32 -1.442695, %v984_v6  ;;  %v979_v6 = vadd.f32 %v978_v45, %v2913_v55 }
 0x106   : > { %v991_v14 = vadd.f32 1.0, %v2279_v9  ;;  %2280 = vpow2.f32 %v2171_v8 }
 0x107   : > { %2282 = vpow2.f32 %v2170_v10  ;;  %v966_v15 = vpop.f32.mrf.mxu2 }
 0x108   : > { %2284 = vrcp.f32 %v991_v14  ;;  %v967_v18 = vadd.f32 %v966_v15, %v2921_v60  ;;  %v1004_v51 = vand.u32 2147483648, %v991_v14  ;;  %vm998_vm7 = vweird.f32 %v991_v14  ;;  %v2949_v15 = vpop.permute.xlu1 %1071 }
 0x109   : > { %v1002_v0 = vand.u32 2147483647, %v991_v14 }
 0x10a   : > { %v1032_v19 = vadd.f32 %v967_v18, %v829_v17  ;;  %v1005_v9 = vor.u32 1.1754944e-38, %v1004_v51  ;;  %v900_v18 = vadd.f32 %v899_v2, %v2937_v63 }
 0x10b   : > { %vm1003_vm12 = vcmp.eq.f32.partialorder %v1002_v0, 8.507059e+37 }
 0x10c   : > { %v2281_v20 = vpop.eup %2280  ;;  %v2172_v21 = vmul.f32 -1.442695, %v1032_v19  ;;  %v1074_v19 = vadd.f32 %v2949_v15, %v828_v1 }
 0x10d   : > { %v2283_v22 = vpop.eup %2282  ;;  %v1039_v23 = vadd.f32 1.0, %v2281_v20 }
 0x10e   : > { %v2285_v25 = vpop.eup %2284  ;;  %2286 = vpow2.f32 %v2172_v21  ;;  %v2931_v29 = vadd.f32 1.0, %v2283_v22 }
 0x10f   : > { %2288 = vrcp.f32 %v1039_v23  ;;  %v994_v28 = vmul.f32 %v2285_v25, %v991_v14  ;;  %v1052_v47 = vand.u32 2147483648, %v1039_v23  ;;  %vm999_vm5 = vweird.f32 %v2285_v25 }
 0x110   : > { %2290 = vrcp.f32 %v2931_v29  ;;  %v1050_v54 = vand.u32 2147483647, %v1039_v23  ;;  %vm1046_vm8 = vweird.f32 %v1039_v23  ;;  %vm2940_vm9 = vmor %vm998_vm7, %vm999_vm5  ;;  %vm1013_vm3 = vweird.f32 %v2931_v29 }
 0x111   : > { %v995_v30 = vsub.f32 1.0, %v994_v28  ;;  %v1053_v8 = vor.u32 1.1754944e-38, %v1052_v47 }
 0x112   : > { %vm1051_vm11 = vcmp.eq.f32.partialorder %v1050_v54, 8.507059e+37 }
 0x113   : > { %v996_v37 = vmul.f32 %v2285_v25, %v995_v30 }
 0x114   : > { %v2287_v31 = vpop.eup %2286 }
 0x115   : > { %v2289_v34 = vpop.eup %2288  ;;  %v1040_v35 = vadd.f32 1.0, %v2287_v31  ;;  %v997_v48 = vadd.f32 %v2285_v25, %v996_v37  ;;  %v980_v37 = vpop.f32.mrf.mxu3 }
 0x116   : > { %v1042_v42 = vmul.f32 %v2289_v34, %v1039_v23  ;;  %vm1047_vm6 = vweird.f32 %v2289_v34  ;;  %v2934_v56 = vpop.eup %2290  ;;  %v819_v23 = vunpack.c.h.bf16 %v2905_v43  ;;  %v981_v43 = vadd.f32 %v980_v37, %v2913_v55 }
 0x117   : > { %2292 = vrcp.f32 %v1040_v35  ;;  %vm1048_vm10 = vmor %vm1046_vm8, %vm1047_vm6  ;;  %v1001_v36 = vsel %vm2940_vm9, %v2285_v25, %v997_v48  ;;  %v1009_v58 = vmul.f32 %v2934_v56, %v2931_v29  ;;  %v1065_v25 = vand.u32 2147483647, %v1040_v35 }
 0x118   : > { %v1043_v44 = vsub.f32 1.0, %v1042_v42  ;;  %v2956_v22 = vsel %vm1003_vm12, %v1005_v9, %v1001_v36  ;;  %v1067_v28 = vand.u32 2147483648, %v1040_v35  ;;  %vm1061_vm14 = vweird.f32 %v1040_v35 }
 0x119   : > { %v1025_v42 = vmul.f32 %v2956_v22, %v900_v18  ;;  %v1023_v48 = vadd.f32 %v2657_v27, %v819_v23  ;;  %vm1066_vm0 = vcmp.eq.f32.partialorder %v1065_v25, 8.507059e+37  ;;  %vm1014_vm2 = vweird.f32 %v2934_v56 }
 0x11a   : > { %v1044_v52 = vmul.f32 %v2289_v34, %v1043_v44  ;;  %v830_v44 = vunpack.c.h.bf16 %v2927_v13  ;;  %v1068_v47 = vor.u32 1.1754944e-38, %v1067_v28  ;;  %vm1015_vm4 = vmor %vm1013_vm3, %vm1014_vm2  ;;  %v821_v18 = vunpack.c.h.bf16 %v2917_v59 }
 0x11b   : > { %v1027_v0 = vadd.f32 %v1025_v42, %v1023_v48 }
 0x11c   : > { %v1045_v40 = vadd.f32 %v2289_v34, %v1044_v52  ;;  %v1075_v1 = vadd.f32 %v2949_v15, %v830_v44 }
 0x11d   : > { %v2293_v5 = vpop.eup %2292 }
 0x11e   : > { %v1049_v10 = vsel %vm1048_vm10, %v2289_v34, %v1045_v40  ;;  %v1057_v14 = vmul.f32 %v2293_v5, %v1040_v35  ;;  %vm1062_vm13 = vweird.f32 %v2293_v5  ;;  %v1010_v34 = vsub.f32 1.0, %v1009_v58 }
 0x11f   : > { %v2951_v17 = vsel %vm1051_vm11, %v1053_v8, %v1049_v10  ;;  %vm1063_vm15 = vmor %vm1061_vm14, %vm1062_vm13  ;;  %v1019_v35 = vand.u32 2147483648, %v2931_v29 }
 0x120   : > { %v1076_v20 = vmul.f32 %v2951_v17, %v979_v6  ;;  %v1058_v21 = vsub.f32 1.0, %v1057_v14  ;;  %v1011_v52 = vmul.f32 %v2934_v56, %v1010_v34  ;;  %v901_v6 = vpop.f32.mrf.mxu1  ;;  %v1106_v28 = vsub.f32 1.0, %v2951_v17 }
 0x121   : > { %v1020_v36 = vor.u32 1.1754944e-38, %v1019_v35  ;;  %v902_v9 = vadd.f32 %v901_v6, %v2937_v63 }
 0x122   : > { %v1078_v30 = vadd.f32 %v1076_v20, %v1074_v19  ;;  %v1059_v31 = vmul.f32 %v2293_v5, %v1058_v21  ;;  %v1012_v13 = vadd.f32 %v2934_v56, %v1011_v52 }
 0x124   : > { %2294 = vtanh.f32 %v1078_v30  ;;  %v1060_v45 = vadd.f32 %v2293_v5, %v1059_v31  ;;  %v1016_v8 = vsel %vm1015_vm4, %v2934_v56, %v1012_v13  ;;  %v1123_v30 = vpop.permute.xlu0 %1122 }
 0x125   : > { %2296 = vtanh.f32 %v1027_v0 }
 0x126   : > { %v1064_v51 = vsel %vm1063_vm15, %v2293_v5, %v1060_v45  ;;  %v1017_v5 = vand.u32 2147483647, %v2931_v29  ;;  %v1024_v29 = vadd.f32 %v2657_v27, %v821_v18  ;;  %v1082_v45 = vsub.f32 1.0, %v2956_v22 }
 0x127   : > { %v1069_v54 = vsel %vm1066_vm0, %v1068_v47, %v1064_v51 }
 0x128   : > { %v1077_v40 = vmul.f32 %v1069_v54, %v981_v43  ;;  %vm1018_vm5 = vcmp.eq.f32.partialorder %v1017_v5, 8.507059e+37  ;;  %v1107_v59 = vsub.f32 1.0, %v1069_v54  ;;  %v1127_v27 = vmul.f32 %v1123_v30, %v1069_v54 }
 0x129   : > { %v1021_v14 = vsel %vm1018_vm5, %v1020_v36, %v1016_v8 }
 0x12a   : > { %v2295_v2 = vpop.eup %2294  ;;  %v1079_v4 = vadd.f32 %v1077_v40, %v1075_v1  ;;  %v1026_v19 = vmul.f32 %v1021_v14, %v902_v9  ;;  %v1083_v43 = vsub.f32 1.0, %v1021_v14 }
 0x12b   : > { %1110 = vrot.lane.b32.xlu1 %v2295_v2, %s2384_s26  ;;  %v2297_v10 = vpop.eup %2296 }
 0x12c   : > { %2298 = vtanh.f32 %v1079_v4  ;;  %v1028_v20 = vadd.f32 %v1026_v19, %v1024_v29  ;;  %v1097_v47 = vpop.permute.xlu0 %1096 }
 0x12e   : > { %2300 = vtanh.f32 %v1028_v20 }
 0x132   : > { %v2299_v58 = vpop.eup %2298 }
 0x133   : > { %1112 = vrot.lane.b32.xlu2 %v2299_v58, %s2384_s26  ;;  %1086 = vrot.lane.b32.xlu1 %v2297_v10, %s2384_s26 }
 0x134   : > { %v2301_v56 = vpop.eup %2300 }
 0x13b   : > { %1120 = vrot.lane.b32.xlu2 %v2841_v33, %s2384_s26  ;;  %1098 = vrot.lane.b32.xlu1 %v2839_v32, %s2384_s26 }
 0x143   : > { %1088 = vrot.lane.b32.xlu2 %v2301_v56, %s2384_s26  ;;  %v3023_v56 = vld [vmem:[#allocation2 + $0x10] sm:$0xff] }
 0x18d   : > { %v1113_v21 = vpop.permute.xlu2 %1112 }
 0x18e   : > { %v1117_v25 = vmul.f32 %v1113_v21, %v1107_v59 }
 0x190   : > { %v2984_v33 = vadd.f32 %v1127_v27, %v1117_v25 }
 0x195   : > { %v1121_v23 = vpop.permute.xlu2 %1120 }
 0x196   : > { %v1126_v34 = vmul.f32 %v1121_v23, %v2951_v17  ;;  %v1102_v17 = vmul.f32 %v1097_v47, %v2956_v22 }
 0x19d   : > { %v1111_v31 = vpop.permute.xlu1 %1110  ;;  %v1089_v48 = vpop.permute.xlu2 %1088 }
 0x19e   : > { %v1116_v37 = vmul.f32 %v1111_v31, %v1106_v28  ;;  %v1093_v54 = vmul.f32 %v1089_v48, %v1083_v43  ;;  %v1147_v31 = vunpack.c.l.bf16 %v3023_v56 }
 0x1a0   : > { %v2986_v42 = vadd.f32 %v1126_v34, %v1116_v37 }
 0x1a2   : > { %v1195_v32 = vpack.c.bf16 %v2984_v33, %v2986_v42 }
 0x1a4   : > { %1197 = vrot.lane.b32.xlu2 %v1195_v32, %s2384_s26 }
 0x1a5   : > { %v1087_v44 = vpop.permute.xlu1 %1086 }
 0x1a6   : > { %v1092_v51 = vmul.f32 %v1087_v44, %v1082_v45 }
 0x1a8   : > { %v2993_v1 = vadd.f32 %v1102_v17, %v1092_v51 }
 0x1ad   : > { %v1099_v52 = vpop.permute.xlu1 %1098 }
 0x1ae   : > { %v1103_v0 = vmul.f32 %v1099_v52, %v1021_v14 }
 0x1b0   : > { %v2995_v40 = vadd.f32 %v1103_v0, %v1093_v54  ;;  %v1146_v0 = vld [vmem:[#allocation2 + $0x18] sm:$0xff] }
 0x1b2   : > { %v1160_v2 = vpack.c.bf16 %v2995_v40, %v2993_v1 }
 0x1b4   : > { %1162 = vrot.lane.b32.xlu0 %v1160_v2, %s2384_s26 }
 0x1fe   : > { %v1198_v4 = vpop.permute.xlu2 %1197 }
 0x1ff   : > { %2175 = vmatmul.msk.bf16.vlgmr.msra.gmra.mxu2 %vm872_vm1, %v1198_v4  ;;  %2176 = vmatmul.msk.bf16.vlgmr.msra.gmra.mxu3 %vm872_vm1, %v1198_v4 }
 0x200   : > { %1660 = vmatpush.bf16.msra.mxu2 %v2675_v38  ;;  %1674 = vmatpush.bf16.msra.mxu3 %v2699_v46  ;;  %v1154_v38 = vld [vmem:[#allocation3 + $0x20] sm:$0xff] }
 0x201   : > { %v1157_v10 = vunpack.c.h.bf16 %v1154_v38 }
 0x203   : > { %v1318_v59 = vadd.f32 %v1157_v10, %v2949_v15 }
 0x204   : > { %1661 = vmatpush.bf16.msra.mxu2 %v2704_v49  ;;  %1675 = vmatpush.bf16.msra.mxu3 %v2742_v62  ;;  %v1156_v49 = vunpack.c.l.bf16 %v1154_v38 }
 0x208   : > { %1662 = vmatpush.bf16.msra.mxu2 %v2717_v53  ;;  %1676 = vmatpush.bf16.msra.mxu3 %v2768_v7 }
 0x20c   : > { %1663 = vmatpush.bf16.msra.mxu2 %v2755_v3  ;;  %1677 = vmatpush.bf16.msra.mxu3 %v2793_v16 }
 0x226   : > { %v1163_v22 = vpop.permute.xlu0 %1162 }
 0x227   : > { %2173 = vmatmul.msk.bf16.vlgmr.msra.gmra.mxu0 %vm872_vm1, %v1163_v22  ;;  %2174 = vmatmul.msk.bf16.vlgmr.msra.gmra.mxu1 %vm872_vm1, %v1163_v22 }
 0x228   : > { %1625 = vmatpush.bf16.msra.mxu0 %v2683_v41  ;;  %1639 = vmatpush.bf16.msra.mxu1 %v2728_v57  ;;  %v1155_v57 = vld [vmem:[#allocation3 + $0x28] sm:$0xff] }
 0x229   : > { %v1158_v3 = vunpack.c.l.bf16 %v1155_v57  ;;  %v1159_v44 = vunpack.c.h.bf16 %v1155_v57 }
 0x22b   : > { %v1319_v2 = vadd.f32 %v1159_v44, %v2949_v15 }
 0x22c   : > { %1626 = vmatpush.bf16.msra.mxu0 %v2706_v50  ;;  %1640 = vmatpush.bf16.msra.mxu1 %v2779_v11 }
 0x230   : > { %1627 = vmatpush.bf16.msra.mxu0 %v2740_v61  ;;  %1641 = vmatpush.bf16.msra.mxu1 %v2816_v24 }
 0x234   : > { %1628 = vmatpush.bf16.msra.mxu0 %v2781_v12  ;;  %1642 = vmatpush.bf16.msra.mxu1 %v2825_v26 }
 0x282   : > { %v1211_v46 = vpop.f32.mrf.mxu2  ;;  %v1225_v6 = vpop.f32.mrf.mxu3 }
 0x283   : > { %v1212_v53 = vadd.f32 %v1211_v46, %v2921_v60  ;;  %v1226_v19 = vadd.f32 %v1225_v6, %v2913_v55 }
 0x285   : > { %v1278_v41 = vadd.f32 %v1212_v53, %v1156_v49  ;;  %v1149_v49 = vunpack.c.l.bf16 %v1146_v0 }
 0x287   : > { %v2179_v62 = vmul.f32 -1.442695, %v1278_v41 }
 0x289   : > { %2302 = vpow2.f32 %v2179_v62 }
 0x28a   : > { %v1213_v50 = vpop.f32.mrf.mxu2  ;;  %v1227_v45 = vpop.f32.mrf.mxu3 }
 0x28b   : > { %v1214_v7 = vadd.f32 %v1213_v50, %v2921_v60  ;;  %v1228_v51 = vadd.f32 %v1227_v45, %v2913_v55 }
 0x28d   : > { %v1279_v61 = vadd.f32 %v1214_v7, %v1158_v3 }
 0x28f   : > { %v2303_v11 = vpop.eup %2302  ;;  %v2180_v16 = vmul.f32 -1.442695, %v1279_v61 }
 0x290   : > { %v1286_v24 = vadd.f32 1.0, %v2303_v11 }
 0x291   : > { %2304 = vpow2.f32 %v2180_v16 }
 0x292   : > { %2306 = vrcp.f32 %v1286_v24  ;;  %v1299_v8 = vand.u32 2147483648, %v1286_v24  ;;  %v1297_v9 = vand.u32 2147483647, %v1286_v24  ;;  %vm1293_vm7 = vweird.f32 %v1286_v24 }
 0x294   : > { %v1300_v18 = vor.u32 1.1754944e-38, %v1299_v8  ;;  %vm1298_vm9 = vcmp.eq.f32.partialorder %v1297_v9, 8.507059e+37 }
 0x297   : > { %v2305_v12 = vpop.eup %2304 }
 0x298   : > { %v2307_v26 = vpop.eup %2306  ;;  %v1287_v13 = vadd.f32 1.0, %v2305_v12 }
 0x299   : > { %v1289_v35 = vmul.f32 %v2307_v26, %v1286_v24  ;;  %vm1294_vm6 = vweird.f32 %v2307_v26 }
 0x29a   : > { %2308 = vrcp.f32 %v1287_v13  ;;  %vm1295_vm8 = vmor %vm1293_vm7, %vm1294_vm6  ;;  %v1312_v28 = vand.u32 2147483647, %v1287_v13  ;;  %v1314_v30 = vand.u32 2147483648, %v1287_v13  ;;  %vm1308_vm11 = vweird.f32 %v1287_v13 }
 0x29b   : > { %v1290_v5 = vsub.f32 1.0, %v1289_v35 }
 0x29c   : > { %v1315_v43 = vor.u32 1.1754944e-38, %v1314_v30  ;;  %vm1313_vm13 = vcmp.eq.f32.partialorder %v1312_v28, 8.507059e+37  ;;  %v1150_v30 = vunpack.c.h.bf16 %v1146_v0 }
 0x29d   : > { %v1291_v36 = vmul.f32 %v2307_v26, %v1290_v5  ;;  %v1148_v5 = vunpack.c.h.bf16 %v3023_v56 }
 0x29f   : > { %v1292_v14 = vadd.f32 %v2307_v26, %v1291_v36 }
 0x2a0   : > { %v2309_v58 = vpop.eup %2308 }
 0x2a1   : > { %v1296_v29 = vsel %vm1295_vm8, %v2307_v26, %v1292_v14  ;;  %v1304_v20 = vmul.f32 %v2309_v58, %v1287_v13  ;;  %vm1309_vm10 = vweird.f32 %v2309_v58 }
 0x2a2   : > { %v3025_v21 = vsel %vm1298_vm9, %v1300_v18, %v1296_v29  ;;  %vm1310_vm12 = vmor %vm1308_vm11, %vm1309_vm10  ;;  %v3044_v18 = vld [vmem:[%s3243_s7] ss:$0 sm:$0xff] }
 0x2a3   : > { %v1320_v23 = vmul.f32 %v3025_v21, %v1226_v19  ;;  %v1305_v25 = vsub.f32 1.0, %v1304_v20  ;;  %v1270_v19 = vadd.f32 %v3044_v18, %v1148_v5  ;;  %v1271_v44 = vadd.f32 %v3044_v18, %v1150_v30 }
 0x2a4   : > { %v1176_v27 = vpop.f32.mrf.mxu0  ;;  %v1190_v12 = vpop.f32.mrf.mxu1  ;;  %v1342_v0 = vsub.f32 1.0, %v3025_v21 }
 0x2a5   : > { %v1322_v34 = vadd.f32 %v1320_v23, %v1318_v59  ;;  %v1306_v37 = vmul.f32 %v2309_v58, %v1305_v25  ;;  %v1177_v32 = vadd.f32 %v1176_v27, %v2903_v39  ;;  %v1191_v9 = vadd.f32 %v1190_v12, %v2937_v63 }
 0x2a7   : > { %2310 = vtanh.f32 %v1322_v34  ;;  %v1307_v47 = vadd.f32 %v2309_v58, %v1306_v37  ;;  %v1230_v48 = vadd.f32 %v1177_v32, %v1147_v31 }
 0x2a9   : > { %v1311_v52 = vsel %vm1310_vm12, %v2309_v58, %v1307_v47  ;;  %v2177_v17 = vmul.f32 -1.442695, %v1230_v48 }
 0x2aa   : > { %v3032_v54 = vsel %vm1313_vm13, %v1315_v43, %v1311_v52 }
 0x2ab   : > { %v1321_v4 = vmul.f32 %v3032_v54, %v1228_v51  ;;  %2312 = vpow2.f32 %v2177_v17  ;;  %v1343_v52 = vsub.f32 1.0, %v3032_v54 }
 0x2ac   : > { %v1178_v22 = vpop.f32.mrf.mxu0  ;;  %v1192_v28 = vpop.f32.mrf.mxu1 }
 0x2ad   : > { %v2311_v38 = vpop.eup %2310  ;;  %v1323_v46 = vadd.f32 %v1321_v4, %v1319_v2  ;;  %v1179_v53 = vadd.f32 %v1178_v22, %v2903_v39  ;;  %v1193_v34 = vadd.f32 %v1192_v28, %v2937_v63  ;;  %v1355_v4 = vmul.f32 %v3032_v54, %v2984_v33 }
 0x2ae   : > { %1346 = vrot.lane.b32.xlu1 %v2311_v38, %s2384_s26  ;;  %v1354_v22 = vmul.f32 %v3025_v21, %v2986_v42 }
 0x2af   : > { %2314 = vtanh.f32 %v1323_v46  ;;  %v1231_v41 = vadd.f32 %v1179_v53, %v1149_v49 }
 0x2b1   : > { %v2313_v62 = vpop.eup %2312  ;;  %v2178_v57 = vmul.f32 -1.442695, %v1231_v41 }
 0x2b2   : > { %v1238_v50 = vadd.f32 1.0, %v2313_v62 }
 0x2b3   : > { %2316 = vpow2.f32 %v2178_v57 }
 0x2b4   : > { %2318 = vrcp.f32 %v1238_v50  ;;  %v1251_v26 = vand.u32 2147483648, %v1238_v50  ;;  %v1249_v35 = vand.u32 2147483647, %v1238_v50  ;;  %vm1245_vm15 = vweird.f32 %v1238_v50 }
 0x2b5   : > { %v2315_v3 = vpop.eup %2314 }
 0x2b6   : > { %1348 = vrot.lane.b32.xlu2 %v2315_v3, %s2384_s26  ;;  %v1252_v36 = vor.u32 1.1754944e-38, %v1251_v26  ;;  %vm1250_vm2 = vcmp.eq.f32.partialorder %v1249_v35, 8.507059e+37  ;;  %v1381_v26 = vld [vmem:[#allocation3 + $0x10] sm:$0xff] }
 0x2b7   : > { %v1383_v35 = vunpack.c.l.bf16 %v1381_v26 }
 0x2b9   : > { %v2317_v7 = vpop.eup %2316 }
 0x2ba   : > { %v2319_v61 = vpop.eup %2318  ;;  %v1239_v11 = vadd.f32 1.0, %v2317_v7 }
 0x2bb   : > { %v1241_v16 = vmul.f32 %v2319_v61, %v1238_v50  ;;  %vm1246_vm14 = vweird.f32 %v2319_v61 }
 0x2bc   : > { %2320 = vrcp.f32 %v1239_v11  ;;  %vm1247_vm0 = vmor %vm1245_vm15, %vm1246_vm14  ;;  %v1266_v56 = vand.u32 2147483648, %v1239_v11  ;;  %v1264_v25 = vand.u32 2147483647, %v1239_v11  ;;  %vm1260_vm4 = vweird.f32 %v1239_v11 }
 0x2bd   : > { %v1242_v24 = vsub.f32 1.0, %v1241_v16 }
 0x2be   : > { %v1267_v27 = vor.u32 1.1754944e-38, %v1266_v56  ;;  %vm1265_vm6 = vcmp.eq.f32.partialorder %v1264_v25, 8.507059e+37 }
 0x2bf   : > { %v1243_v13 = vmul.f32 %v2319_v61, %v1242_v24 }
 0x2c1   : > { %v1244_v6 = vadd.f32 %v2319_v61, %v1243_v13 }
 0x2c2   : > { %v2321_v8 = vpop.eup %2320 }
 0x2c3   : > { %v1248_v10 = vsel %vm1247_vm0, %v2319_v61, %v1244_v6  ;;  %v1256_v14 = vmul.f32 %v2321_v8, %v1239_v11  ;;  %vm1261_vm3 = vweird.f32 %v2321_v8 }
 0x2c4   : > { %v1253_v58 = vsel %vm1250_vm2, %v1252_v36, %v1248_v10  ;;  %vm1262_vm5 = vmor %vm1260_vm4, %vm1261_vm3  ;;  %v1382_v36 = vld [vmem:[#allocation3 + $0x18] sm:$0xff] }
 0x2c5   : > { %v1272_v29 = vmul.f32 %v1253_v58, %v1191_v9  ;;  %v1257_v20 = vsub.f32 1.0, %v1256_v14  ;;  %v1326_v62 = vsub.f32 1.0, %v1253_v58  ;;  %v1338_v54 = vmul.f32 %v1253_v58, %v2993_v1 }
 0x2c6   : > { %v1385_v10 = vunpack.c.l.bf16 %v1382_v36 }
 0x2c7   : > { %v1274_v59 = vadd.f32 %v1272_v29, %v1270_v19  ;;  %v1258_v23 = vmul.f32 %v2321_v8, %v1257_v20 }
 0x2c9   : > { %2322 = vtanh.f32 %v1274_v59  ;;  %v1259_v31 = vadd.f32 %v2321_v8, %v1258_v23 }
 0x2cb   : > { %v1263_v37 = vsel %vm1262_vm5, %v2321_v8, %v1259_v31 }
 0x2cc   : > { %v1268_v32 = vsel %vm1265_vm6, %v1267_v27, %v1263_v37  ;;  %v1384_v37 = vunpack.c.h.bf16 %v1381_v26  ;;  %v1373_v26 = vld [vmem:[#allocation2 + $0x20] sm:$0xff] }
 0x2cd   : > { %v1273_v45 = vmul.f32 %v1268_v32, %v1193_v34  ;;  %v1327_v50 = vsub.f32 1.0, %v1268_v32  ;;  %v1339_v7 = vmul.f32 %v1268_v32, %v2995_v40 }
 0x2cf   : > { %v2323_v47 = vpop.eup %2322  ;;  %v1275_v48 = vadd.f32 %v1273_v45, %v1271_v44 }
 0x2d0   : > { %1330 = vrot.lane.b32.xlu0 %v2323_v47, %s2384_s26 }
 0x2d1   : > { %2324 = vtanh.f32 %v1275_v48 }
 0x2d7   : > { %v2325_v43 = vpop.eup %2324 }
 0x2d8   : > { %1332 = vrot.lane.b32.xlu1 %v2325_v43, %s2384_s26 }
 0x310   : > { %v1349_v51 = vpop.permute.xlu2 %1348 }
 0x311   : > { %v1353_v17 = vmul.f32 %v1349_v51, %v1343_v52  ;;  %v1545_v52 = vadd.f32 %v1384_v37, %v2949_v15  ;;  %v1376_v37 = vunpack.c.h.bf16 %v1373_v26 }
 0x313   : > { %v3057_v46 = vadd.f32 %v1355_v4, %v1353_v17 }
 0x320   : > { %v1347_v2 = vpop.permute.xlu1 %1346 }
 0x321   : > { %v1352_v38 = vmul.f32 %v1347_v2, %v1342_v0 }
 0x323   : > { %v3059_v49 = vadd.f32 %v1354_v22, %v1352_v38 }
 0x325   : > { %v1422_v53 = vpack.c.bf16 %v3057_v46, %v3059_v49 }
 0x327   : > { %1424 = vrot.lane.b32.xlu2 %v1422_v53, %s2384_s26 }
 0x342   : > { %v1331_v41 = vpop.permute.xlu0 %1330 }
 0x343   : > { %v1336_v57 = vmul.f32 %v1331_v41, %v1326_v62  ;;  %v1386_v41 = vunpack.c.h.bf16 %v1382_v36  ;;  %v1374_v36 = vld [vmem:[#allocation2 + $0x28] sm:$0xff] }
 0x345   : > { %v3066_v61 = vadd.f32 %v1338_v54, %v1336_v57 }
 0x34a   : > { %v1333_v3 = vpop.permute.xlu1 %1332 }
 0x34b   : > { %v1337_v21 = vmul.f32 %v1333_v3, %v1327_v50 }
 0x34d   : > { %v3068_v11 = vadd.f32 %v1339_v7, %v1337_v21  ;;  %v1546_v7 = vadd.f32 %v1386_v41, %v2949_v15 }
 0x34f   : > { %v1387_v16 = vpack.c.bf16 %v3068_v11, %v3066_v61 }
 0x351   : > { %1389 = vrot.lane.b32.xlu0 %v1387_v16, %s2384_s26 }
 0x381   : > { %v1425_v24 = vpop.permute.xlu2 %1424 }
 0x382   : > { %2185 = vmatmul.msk.bf16.vlgmr.msrb.gmra.mxu2 %vm872_vm1, %v1425_v24  ;;  %2186 = vmatmul.msk.bf16.vlgmr.msrb.gmra.mxu3 %vm872_vm1, %v1425_v24 }
 0x3c3   : > { %v1390_v12 = vpop.permute.xlu0 %1389 }
 0x3c4   : > { %2183 = vmatmul.msk.bf16.vlgmr.msrb.gmra.mxu0 %vm872_vm1, %v1390_v12  ;;  %2184 = vmatmul.msk.bf16.vlgmr.msrb.gmra.mxu1 %vm872_vm1, %v1390_v12 }
 0x405   : > { %v1438_v13 = vpop.f32.mrf.mxu2  ;;  %v1452_v30 = vpop.f32.mrf.mxu3 }
 0x406   : > { %v1439_v5 = vadd.f32 %v1438_v13, %v2921_v60  ;;  %v1453_v47 = vadd.f32 %v1452_v30, %v2913_v55 }
 0x408   : > { %v1505_v6 = vadd.f32 %v1439_v5, %v1383_v35  ;;  %v1375_v35 = vunpack.c.l.bf16 %v1373_v26 }
 0x40a   : > { %v2189_v8 = vmul.f32 -1.442695, %v1505_v6 }
 0x40c   : > { %2326 = vpow2.f32 %v2189_v8 }
 0x40d   : > { %v1440_v9 = vpop.f32.mrf.mxu2  ;;  %v1454_v53 = vpop.f32.mrf.mxu3 }
 0x40e   : > { %v1441_v14 = vadd.f32 %v1440_v9, %v2921_v60  ;;  %v1455_v50 = vadd.f32 %v1454_v53, %v2913_v55 }
 0x410   : > { %v1506_v58 = vadd.f32 %v1441_v14, %v1385_v10  ;;  %v1377_v10 = vunpack.c.l.bf16 %v1374_v36 }
 0x412   : > { %v2327_v19 = vpop.eup %2326  ;;  %v2190_v29 = vmul.f32 -1.442695, %v1506_v58 }
 0x413   : > { %v1513_v20 = vadd.f32 1.0, %v2327_v19 }
 0x414   : > { %2328 = vpow2.f32 %v2190_v29 }
 0x415   : > { %2330 = vrcp.f32 %v1513_v20  ;;  %v1526_v31 = vand.u32 2147483648, %v1513_v20  ;;  %v1524_v34 = vand.u32 2147483647, %v1513_v20  ;;  %vm1520_vm8 = vweird.f32 %v1513_v20 }
 0x417   : > { %v1527_v45 = vor.u32 1.1754944e-38, %v1526_v31  ;;  %vm1525_vm10 = vcmp.eq.f32.partialorder %v1524_v34, 8.507059e+37 }
 0x41a   : > { %v2329_v56 = vpop.eup %2328 }
 0x41b   : > { %v2331_v59 = vpop.eup %2330  ;;  %v1514_v23 = vadd.f32 1.0, %v2329_v56 }
 0x41c   : > { %v1516_v25 = vmul.f32 %v2331_v59, %v1513_v20  ;;  %vm1521_vm7 = vweird.f32 %v2331_v59 }
 0x41d   : > { %2332 = vrcp.f32 %v1514_v23  ;;  %vm1522_vm9 = vmor %vm1520_vm8, %vm1521_vm7  ;;  %v1541_v2 = vand.u32 2147483648, %v1514_v23  ;;  %v1539_v38 = vand.u32 2147483647, %v1514_v23  ;;  %vm1535_vm12 = vweird.f32 %v1514_v23 }
 0x41e   : > { %v1517_v28 = vsub.f32 1.0, %v1516_v25 }
 0x41f   : > { %v1542_v57 = vor.u32 1.1754944e-38, %v1541_v2  ;;  %vm1540_vm14 = vcmp.eq.f32.partialorder %v1539_v38, 8.507059e+37 }
 0x420   : > { %v1518_v27 = vmul.f32 %v2331_v59, %v1517_v28 }
 0x422   : > { %v1519_v32 = vadd.f32 %v2331_v59, %v1518_v27 }
 0x423   : > { %v2333_v44 = vpop.eup %2332 }
 0x424   : > { %v1523_v48 = vsel %vm1522_vm9, %v2331_v59, %v1519_v32  ;;  %v1531_v43 = vmul.f32 %v2333_v44, %v1514_v23  ;;  %vm1536_vm11 = vweird.f32 %v2333_v44 }
 0x425   : > { %v3080_v51 = vsel %vm1525_vm10, %v1527_v45, %v1523_v48  ;;  %vm1537_vm13 = vmor %vm1535_vm12, %vm1536_vm11 }
 0x426   : > { %v1547_v17 = vmul.f32 %v3080_v51, %v1453_v47  ;;  %v1532_v0 = vsub.f32 1.0, %v1531_v43 }
 0x428   : > { %v1549_v4 = vadd.f32 %v1547_v17, %v1545_v52  ;;  %v1533_v22 = vmul.f32 %v2333_v44, %v1532_v0  ;;  %v1497_v17 = vadd.f32 %v3044_v18, %v1376_v37 }
 0x42a   : > { %2334 = vtanh.f32 %v1549_v4  ;;  %v1534_v62 = vadd.f32 %v2333_v44, %v1533_v22 }
 0x42c   : > { %v1538_v3 = vsel %vm1537_vm13, %v2333_v44, %v1534_v62  ;;  %v1378_v62 = vunpack.c.h.bf16 %v1374_v36 }
 0x42d   : > { %v3085_v54 = vsel %vm1540_vm14, %v1542_v57, %v1538_v3 }
 0x42e   : > { %v1548_v21 = vmul.f32 %v3085_v54, %v1455_v50 }
 0x430   : > { %v2335_v16 = vpop.eup %2334  ;;  %v1550_v24 = vadd.f32 %v1548_v21, %v1546_v7 }
 0x431   : > { %1573 = vrot.lane.b32.xlu1 %v2335_v16, %s2384_s26  ;;  %v1498_v16 = vadd.f32 %v3044_v18, %v1378_v62 }
 0x432   : > { %2336 = vtanh.f32 %v1550_v24 }
 0x438   : > { %v2337_v12 = vpop.eup %2336 }
 0x439   : > { %1575 = vrot.lane.b32.xlu2 %v2337_v12, %s2384_s26 }
 0x441   : > { %v1403_v13 = vpop.f32.mrf.mxu0  ;;  %v1417_v30 = vpop.f32.mrf.mxu1 }
 0x442   : > { %v1404_v5 = vadd.f32 %v1403_v13, %v2903_v39  ;;  %v1418_v47 = vadd.f32 %v1417_v30, %v2937_v63 }
 0x444   : > { %v1457_v6 = vadd.f32 %v1404_v5, %v1375_v35  ;;  %v1570_v5 = vsub.f32 1.0, %v3085_v54 }
 0x446   : > { %v2187_v8 = vmul.f32 -1.442695, %v1457_v6 }
 0x448   : > { %2338 = vpow2.f32 %v2187_v8  ;;  %v1569_v8 = vsub.f32 1.0, %v3080_v51 }
 0x449   : > { %v1405_v9 = vpop.f32.mrf.mxu0  ;;  %v1419_v41 = vpop.f32.mrf.mxu1 }
 0x44a   : > { %v1406_v14 = vadd.f32 %v1405_v9, %v2903_v39  ;;  %v1420_v3 = vadd.f32 %v1419_v41, %v2937_v63  ;;  %v1582_v9 = vmul.f32 %v3085_v54, %v3057_v46 }
 0x44c   : > { %v1458_v58 = vadd.f32 %v1406_v14, %v1377_v10  ;;  %v1581_v10 = vmul.f32 %v3080_v51, %v3059_v49 }
 0x44e   : > { %v2339_v19 = vpop.eup %2338  ;;  %v2188_v29 = vmul.f32 -1.442695, %v1458_v58 }
 0x44f   : > { %v1465_v20 = vadd.f32 1.0, %v2339_v19 }
 0x450   : > { %2340 = vpow2.f32 %v2188_v29 }
 0x451   : > { %2342 = vrcp.f32 %v1465_v20  ;;  %v1478_v31 = vand.u32 2147483648, %v1465_v20  ;;  %v1476_v34 = vand.u32 2147483647, %v1465_v20  ;;  %vm1472_vm0 = vweird.f32 %v1465_v20 }
 0x453   : > { %v1479_v45 = vor.u32 1.1754944e-38, %v1478_v31  ;;  %vm1477_vm3 = vcmp.eq.f32.partialorder %v1476_v34, 8.507059e+37 }
 0x456   : > { %v2341_v56 = vpop.eup %2340 }
 0x457   : > { %v2343_v59 = vpop.eup %2342  ;;  %v1466_v23 = vadd.f32 1.0, %v2341_v56 }
 0x458   : > { %v1468_v25 = vmul.f32 %v2343_v59, %v1465_v20  ;;  %vm1473_vm15 = vweird.f32 %v2343_v59 }
 0x459   : > { %2344 = vrcp.f32 %v1466_v23  ;;  %vm1474_vm2 = vmor %vm1472_vm0, %vm1473_vm15  ;;  %v1493_v4 = vand.u32 2147483648, %v1466_v23  ;;  %v1491_v53 = vand.u32 2147483647, %v1466_v23  ;;  %vm1487_vm5 = vweird.f32 %v1466_v23 }
 0x45a   : > { %v1469_v28 = vsub.f32 1.0, %v1468_v25 }
 0x45b   : > { %v1494_v50 = vor.u32 1.1754944e-38, %v1493_v4  ;;  %vm1492_vm7 = vcmp.eq.f32.partialorder %v1491_v53, 8.507059e+37 }
 0x45c   : > { %v1470_v27 = vmul.f32 %v2343_v59, %v1469_v28 }
 0x45e   : > { %v1471_v32 = vadd.f32 %v2343_v59, %v1470_v27 }
 0x45f   : > { %v2345_v44 = vpop.eup %2344 }
 0x460   : > { %v1475_v48 = vsel %vm1474_vm2, %v2343_v59, %v1471_v32  ;;  %v1483_v43 = vmul.f32 %v2345_v44, %v1466_v23  ;;  %vm1488_vm4 = vweird.f32 %v2345_v44  ;;  %v1608_v32 = vld [vmem:[#allocation3] sm:$0xff] }
 0x461   : > { %v1480_v52 = vsel %vm1477_vm3, %v1479_v45, %v1475_v48  ;;  %vm1489_vm6 = vmor %vm1487_vm5, %vm1488_vm4  ;;  %v1610_v45 = vunpack.c.l.bf16 %v1608_v32  ;;  %v1611_v62 = vunpack.c.h.bf16 %v1608_v32 }
 0x462   : > { %v1499_v0 = vmul.f32 %v1480_v52, %v1418_v47  ;;  %v1484_v2 = vsub.f32 1.0, %v1483_v43  ;;  %v1553_v56 = vsub.f32 1.0, %v1480_v52  ;;  %v1565_v54 = vmul.f32 %v1480_v52, %v3066_v61 }
 0x464   : > { %v1501_v22 = vadd.f32 %v1499_v0, %v1497_v17  ;;  %v1485_v38 = vmul.f32 %v2345_v44, %v1484_v2 }
 0x466   : > { %2346 = vtanh.f32 %v1501_v22  ;;  %v1486_v57 = vadd.f32 %v2345_v44, %v1485_v38 }
 0x468   : > { %v1490_v7 = vsel %vm1489_vm6, %v2345_v44, %v1486_v57 }
 0x469   : > { %v1495_v21 = vsel %vm1492_vm7, %v1494_v50, %v1490_v7 }
 0x46a   : > { %v1500_v24 = vmul.f32 %v1495_v21, %v1420_v3  ;;  %v1554_v23 = vsub.f32 1.0, %v1495_v21  ;;  %v1566_v28 = vmul.f32 %v1495_v21, %v3068_v11 }
 0x46c   : > { %v2347_v12 = vpop.eup %2346  ;;  %v1502_v26 = vadd.f32 %v1500_v24, %v1498_v16  ;;  %v1772_v16 = vadd.f32 %v1611_v62, %v2949_v15 }
 0x46d   : > { %1557 = vrot.lane.b32.xlu0 %v2347_v12, %s2384_s26 }
 0x46e   : > { %2348 = vtanh.f32 %v1502_v26 }
 0x474   : > { %v2349_v13 = vpop.eup %2348 }
 0x475   : > { %1559 = vrot.lane.b32.xlu1 %v2349_v13, %s2384_s26 }
 0x493   : > { %v1576_v35 = vpop.permute.xlu2 %1575 }
 0x494   : > { %v1580_v6 = vmul.f32 %v1576_v35, %v1570_v5  ;;  %v3136_v35 = vld [vmem:[#allocation3 + $0x8] sm:$0xff] }
 0x496   : > { %v3105_v58 = vadd.f32 %v1582_v9, %v1580_v6  ;;  %v1612_v6 = vunpack.c.l.bf16 %v3136_v35 }
 0x4a3   : > { %v1574_v36 = vpop.permute.xlu1 %1573 }
 0x4a4   : > { %v1579_v14 = vmul.f32 %v1574_v36, %v1569_v8 }
 0x4a6   : > { %v3107_v19 = vadd.f32 %v1581_v10, %v1579_v14  ;;  %v1600_v10 = vld [vmem:[#allocation2 + $0x30] sm:$0xff] }
 0x4a7   : > { %v1603_v62 = vunpack.c.h.bf16 %v1600_v10 }
 0x4a8   : > { %v1649_v29 = vpack.c.bf16 %v3105_v58, %v3107_v19 }
 0x4aa   : > { %1651 = vrot.lane.b32.xlu2 %v1649_v29, %s2384_s26 }
 0x4df   : > { %v1558_v20 = vpop.permute.xlu0 %1557 }
 0x4e0   : > { %v1563_v59 = vmul.f32 %v1558_v20, %v1553_v56  ;;  %v1602_v20 = vunpack.c.l.bf16 %v1600_v10  ;;  %v1613_v10 = vunpack.c.h.bf16 %v3136_v35 }
 0x4e2   : > { %v3114_v30 = vadd.f32 %v1565_v54, %v1563_v59 }
 0x4e7   : > { %v1560_v25 = vpop.permute.xlu1 %1559 }
 0x4e8   : > { %v1564_v51 = vmul.f32 %v1560_v25, %v1554_v23  ;;  %v3141_v23 = vld [vmem:[#allocation2 + $0x38] sm:$0xff] }
 0x4ea   : > { %v3116_v31 = vadd.f32 %v1566_v28, %v1564_v51 }
 0x4ec   : > { %v1614_v27 = vpack.c.bf16 %v3116_v31, %v3114_v30 }
 0x4ee   : > { %1616 = vrot.lane.b32.xlu0 %v1614_v27, %s2384_s26 }
 0x504   : > { %v1652_v34 = vpop.permute.xlu2 %1651 }
 0x505   : > { %2195 = vmatmul.msk.bf16.vlgmr.msra.gmra.mxu2 %vm872_vm1, %v1652_v34  ;;  %2196 = vmatmul.msk.bf16.vlgmr.msra.gmra.mxu3 %vm872_vm1, %v1652_v34 }
 0x560   : > { %v1617_v37 = vpop.permute.xlu0 %1616 }
 0x561   : > { %2193 = vmatmul.msk.bf16.vlgmr.msra.gmra.mxu0 %vm872_vm1, %v1617_v37  ;;  %2194 = vmatmul.msk.bf16.vlgmr.msra.gmra.mxu1 %vm872_vm1, %v1617_v37 }
 0x588   : > { %v1665_v44 = vpop.f32.mrf.mxu2  ;;  %v1679_v41 = vpop.f32.mrf.mxu3 }
 0x589   : > { %v1666_v47 = vadd.f32 %v1665_v44, %v2921_v60  ;;  %v1680_v3 = vadd.f32 %v1679_v41, %v2913_v55 }
 0x58b   : > { %v1732_v48 = vadd.f32 %v1666_v47, %v1610_v45 }
 0x58d   : > { %v2199_v43 = vmul.f32 -1.442695, %v1732_v48 }
 0x58f   : > { %2350 = vpow2.f32 %v2199_v43 }
 0x590   : > { %v1667_v13 = vpop.f32.mrf.mxu2 }
 0x591   : > { %v1668_v5 = vadd.f32 %v1667_v13, %v2921_v60  ;;  %v1604_v60 = vunpack.c.l.bf16 %v3141_v23 }
 0x593   : > { %v1733_v8 = vadd.f32 %v1668_v5, %v1612_v6 }
 0x595   : > { %v2351_v52 = vpop.eup %2350  ;;  %v2200_v36 = vmul.f32 -1.442695, %v1733_v8  ;;  %v1724_v8 = vadd.f32 %v3044_v18, %v1603_v62 }
 0x596   : > { %v1740_v17 = vadd.f32 1.0, %v2351_v52 }
 0x598   : > { %2352 = vrcp.f32 %v1740_v17  ;;  %v1753_v22 = vand.u32 2147483648, %v1740_v17  ;;  %v1751_v53 = vand.u32 2147483647, %v1740_v17  ;;  %vm1747_vm9 = vweird.f32 %v1740_v17 }
 0x59a   : > { %v1754_v50 = vor.u32 1.1754944e-38, %v1753_v22  ;;  %vm1752_vm11 = vcmp.eq.f32.partialorder %v1751_v53, 8.507059e+37 }
 0x59e   : > { %v2353_v0 = vpop.eup %2352 }
 0x59f   : > { %v1743_v2 = vmul.f32 %v2353_v0, %v1740_v17  ;;  %vm1748_vm8 = vweird.f32 %v2353_v0 }
 0x5a0   : > { %vm1749_vm10 = vmor %vm1747_vm9, %vm1748_vm8 }
 0x5a1   : > { %v1744_v4 = vsub.f32 1.0, %v1743_v2 }
 0x5a3   : > { %v1745_v38 = vmul.f32 %v2353_v0, %v1744_v4 }
 0x5a5   : > { %v1746_v57 = vadd.f32 %v2353_v0, %v1745_v38 }
 0x5a7   : > { %v1750_v7 = vsel %vm1749_vm10, %v2353_v0, %v1746_v57 }
 0x5a8   : > { %v3127_v21 = vsel %vm1752_vm11, %v1754_v50, %v1750_v7 }
 0x5a9   : > { %v1774_v24 = vmul.f32 %v3127_v21, %v1680_v3 }
 0x5ab   : > { %v1776_v12 = vadd.f32 %v1774_v24, %v1772_v16  ;;  %v1681_v24 = vpop.f32.mrf.mxu3 }
 0x5ad   : > { %2354 = vtanh.f32 %v1776_v12 }
 0x5ae   : > { %2356 = vpow2.f32 %v2200_v36 }
 0x5b3   : > { %v2355_v26 = vpop.eup %2354 }
 0x5b4   : > { %1800 = vrot.lane.b32.xlu0 %v2355_v26, %s2384_s26  ;;  %v2357_v9 = vpop.eup %2356 }
 0x5b5   : > { %v1741_v29 = vadd.f32 1.0, %v2357_v9 }
 0x5b7   : > { %2358 = vrcp.f32 %v1741_v29  ;;  %v1768_v2 = vand.u32 2147483648, %v1741_v29  ;;  %vm1762_vm14 = vweird.f32 %v1741_v29  ;;  %v1766_v53 = vand.u32 2147483647, %v1741_v29 }
 0x5b9   : > { %v1769_v7 = vor.u32 1.1754944e-38, %v1768_v2  ;;  %vm1767_vm4 = vcmp.eq.f32.partialorder %v1766_v53, 8.507059e+37 }
 0x5bc   : > { %1134 = vrot.lane.b32.xlu0 %v2995_v40, %s2384_s26 }
 0x5bd   : > { %v2359_v28 = vpop.eup %2358 }
 0x5be   : > { %v1758_v37 = vmul.f32 %v2359_v28, %v1741_v29  ;;  %vm1763_vm12 = vweird.f32 %v2359_v28 }
 0x5bf   : > { %vm3145_vm15 = vmor %vm1762_vm14, %vm1763_vm12 }
 0x5c0   : > { %v1759_v44 = vsub.f32 1.0, %v1758_v37 }
 0x5c2   : > { %v1760_v48 = vmul.f32 %v2359_v28, %v1759_v44 }
 0x5c4   : > { %1587 = vrot.lane.b32.xlu0 %v3114_v30, %s2384_s26  ;;  %v1761_v0 = vadd.f32 %v2359_v28, %v1760_v48 }
 0x5c6   : > { %v1765_v3 = vsel %vm3145_vm15, %v2359_v28, %v1761_v0  ;;  %v1773_v28 = vadd.f32 %v1613_v10, %v2949_v15 }
 0x5c7   : > { %v3154_v6 = vsel %vm1767_vm4, %v1769_v7, %v1765_v3 }
 0x5de   : > { %v1630_v14 = vpop.f32.mrf.mxu0 }
 0x5df   : > { %v1631_v40 = vadd.f32 %v1630_v14, %v2903_v39  ;;  %v1682_v14 = vadd.f32 %v1681_v24, %v2913_v55 }
 0x5e1   : > { %v1684_v56 = vadd.f32 %v1631_v40, %v1602_v20 }
 0x5e3   : > { %v2197_v59 = vmul.f32 -1.442695, %v1684_v56 }
 0x5e5   : > { %2360 = vpow2.f32 %v2197_v59  ;;  %v1775_v59 = vmul.f32 %v3154_v6, %v1682_v14 }
 0x5e6   : > { %v1632_v25 = vpop.f32.mrf.mxu0 }
 0x5e7   : > { %v1633_v54 = vadd.f32 %v1632_v25, %v2903_v39  ;;  %v1644_v39 = vpop.f32.mrf.mxu1 }
 0x5e8   : > { %v1645_v12 = vadd.f32 %v1644_v39, %v2937_v63 }
 0x5e9   : > { %v1685_v51 = vadd.f32 %v1633_v54, %v1604_v60  ;;  %v1605_v60 = vunpack.c.h.bf16 %v3141_v23 }
 0x5eb   : > { %v2361_v27 = vpop.eup %2360  ;;  %v2198_v34 = vmul.f32 -1.442695, %v1685_v51  ;;  %v1725_v37 = vadd.f32 %v3044_v18, %v1605_v60 }
 0x5ec   : > { %v1692_v32 = vadd.f32 1.0, %v2361_v27  ;;  %v1777_v27 = vadd.f32 %v1775_v59, %v1773_v28 }
 0x5ed   : > { %2362 = vpow2.f32 %v2198_v34 }
 0x5ee   : > { %2364 = vrcp.f32 %v1692_v32  ;;  %v1705_v4 = vand.u32 2147483648, %v1692_v32  ;;  %v1703_v38 = vand.u32 2147483647, %v1692_v32  ;;  %vm1699_vm0 = vweird.f32 %v1692_v32 }
 0x5ef   : > { %v1646_v25 = vpop.f32.mrf.mxu1 }
 0x5f0   : > { %v1706_v16 = vor.u32 1.1754944e-38, %v1705_v4  ;;  %vm1704_vm3 = vcmp.eq.f32.partialorder %v1703_v38, 8.507059e+37  ;;  %v1647_v35 = vadd.f32 %v1646_v25, %v2937_v63  ;;  %v1796_v63 = vsub.f32 1.0, %v3127_v21 }
 0x5f3   : > { %v2363_v45 = vpop.eup %2362 }
 0x5f4   : > { %v2365_v47 = vpop.eup %2364  ;;  %v1693_v43 = vadd.f32 1.0, %v2363_v45 }
 0x5f5   : > { %v1695_v52 = vmul.f32 %v2365_v47, %v1692_v32  ;;  %vm1700_vm13 = vweird.f32 %v2365_v47 }
 0x5f6   : > { %2366 = vrcp.f32 %v1693_v43  ;;  %vm1701_vm2 = vmor %vm1699_vm0, %vm1700_vm13  ;;  %v1720_v29 = vand.u32 2147483648, %v1693_v43  ;;  %v1718_v56 = vand.u32 2147483647, %v1693_v43  ;;  %vm1714_vm6 = vweird.f32 %v1693_v43 }
 0x5f7   : > { %v1696_v17 = vsub.f32 1.0, %v1695_v52 }
 0x5f8   : > { %v1721_v51 = vor.u32 1.1754944e-38, %v1720_v29  ;;  %vm1719_vm8 = vcmp.eq.f32.partialorder %v1718_v56, 8.507059e+37 }
 0x5f9   : > { %v1697_v22 = vmul.f32 %v2365_v47, %v1696_v17 }
 0x5fb   : > { %v1698_v57 = vadd.f32 %v2365_v47, %v1697_v22 }
 0x5fc   : > { %v2367_v50 = vpop.eup %2366 }
 0x5fd   : > { %v1702_v26 = vsel %vm1701_vm2, %v2365_v47, %v1698_v57  ;;  %v1710_v13 = vmul.f32 %v2367_v50, %v1693_v43  ;;  %vm1715_vm5 = vweird.f32 %v2367_v50  ;;  %v1808_v47 = vmul.f32 %v3127_v21, %v3107_v19 }
 0x5fe   : > { %v3152_v5 = vsel %vm1704_vm3, %v1706_v16, %v1702_v26  ;;  %vm1716_vm7 = vmor %vm1714_vm6, %vm1715_vm5  ;;  %v1809_v57 = vmul.f32 %v3154_v6, %v3105_v58 }
 0x5ff   : > { %v1726_v36 = vmul.f32 %v3152_v5, %v1645_v12  ;;  %v1711_v9 = vsub.f32 1.0, %v1710_v13  ;;  %v1780_v4 = vsub.f32 1.0, %v3152_v5 }
 0x601   : > { %v1728_v20 = vadd.f32 %v1726_v36, %v1724_v8  ;;  %v1712_v40 = vmul.f32 %v2367_v50, %v1711_v9 }
 0x603   : > { %2368 = vtanh.f32 %v1728_v20  ;;  %v1713_v54 = vadd.f32 %v2367_v50, %v1712_v40 }
 0x604   : > { %2370 = vtanh.f32 %v1777_v27 }
 0x605   : > { %v1717_v55 = vsel %vm1716_vm7, %v2367_v50, %v1713_v54 }
 0x606   : > { %v1722_v34 = vsel %vm1719_vm8, %v1721_v51, %v1717_v55 }
 0x607   : > { %v1727_v32 = vmul.f32 %v1722_v34, %v1647_v35  ;;  %v1781_v52 = vsub.f32 1.0, %v1722_v34 }
 0x609   : > { %v2369_v44 = vpop.eup %2368  ;;  %v1729_v45 = vadd.f32 %v1727_v32, %v1725_v37 }
 0x60a   : > { %1784 = vrot.lane.b32.xlu1 %v2369_v44, %s2384_s26  ;;  %v2371_v23 = vpop.eup %2370 }
 0x60b   : > { %2372 = vtanh.f32 %v1729_v45 }
 0x611   : > { %v2373_v15 = vpop.eup %2372 }
 0x612   : > { %1802 = vrot.lane.b32.xlu1 %v2371_v23, %s2384_s26  ;;  %1786 = vrot.lane.b32.xlu2 %v2373_v15, %s2384_s26 }
 0x61a   : > { %1360 = vrot.lane.b32.xlu1 %v3066_v61, %s2384_s26  ;;  %1132 = vrot.lane.b32.xlu2 %v2993_v1, %s2384_s26 }
 0x622   : > { %1589 = vrot.lane.b32.xlu1 %v3116_v31, %s2384_s26  ;;  %1362 = vrot.lane.b32.xlu2 %v3068_v11, %s2384_s26  ;;  %v1793_v11 = vmul.f32 %v1722_v34, %v3116_v31 }
 0x626   : > { %v1801_v18 = vpop.permute.xlu0 %1800 }
 0x627   : > { %v1806_v48 = vmul.f32 %v1801_v18, %v1796_v63 }
 0x629   : > { %v1810_v43 = vadd.f32 %v1808_v47, %v1806_v48 }
 0x62b   : > { %1829 = vrot.lane.b32.xlu1 %v1810_v43, %s2384_s26 }
 0x62e   : > { %v1135_v61 = vpop.permute.xlu0 %1134 }
 0x62f   : > { %v1139_v1 = vsel %vm872_vm1, %v1135_v61, %v2984_v33  ;;  %v1792_v33 = vmul.f32 %v3152_v5, %v3114_v30 }
 0x630   : > { %1141 = vst [vmem:[%s2462_s25 + $0x8] sm:$0xff] %v1139_v1 }
 0x636   : > { %v1588_v30 = vpop.permute.xlu0 %1587 }
 0x637   : > { %v1593_v16 = vsel %vm872_vm1, %v1588_v30, %v3107_v19 }
 0x638   : > { %2191 = vst [vmem:[%s2462_s25 + $0x20] sm:$0xff] %v1593_v16 }
 0x66c   : > { %v1787_v17 = vpop.permute.xlu2 %1786 }
 0x66d   : > { %v1791_v0 = vmul.f32 %v1787_v17, %v1781_v52 }
 0x66f   : > { %v1795_v2 = vadd.f32 %v1793_v11, %v1791_v0 }
 0x671   : > { %1816 = vrot.lane.b32.xlu0 %v1795_v2, %s2384_s26 }
 0x674   : > { %v1133_v39 = vpop.permute.xlu2 %1132 }
 0x675   : > { %v1138_v21 = vsel %vm872_vm1, %v1133_v39, %v2986_v42  ;;  %v1797_v42 = vsub.f32 1.0, %v3154_v6 }
 0x676   : > { %1140 = vst [vmem:[%s2462_s25] sm:$0xff] %v1138_v21 }
 0x67c   : > { %v1785_v22 = vpop.permute.xlu1 %1784  ;;  %v1363_v38 = vpop.permute.xlu2 %1362 }
 0x67d   : > { %v1790_v53 = vmul.f32 %v1785_v22, %v1780_v4  ;;  %v1367_v31 = vsel %vm872_vm1, %v1363_v38, %v3057_v46 }
 0x67e   : > { %2182 = vst [vmem:[%s2462_s25 + $0x18] sm:$0xff] %v1367_v31 }
 0x67f   : > { %v1794_v41 = vadd.f32 %v1792_v33, %v1790_v53 }
 0x681   : > { %1814 = vrot.lane.b32.xlu2 %v1794_v41, %s2384_s26 }
 0x684   : > { %v1803_v62 = vpop.permute.xlu1 %1802 }
 0x685   : > { %v1807_v50 = vmul.f32 %v1803_v62, %v1797_v42 }
 0x687   : > { %v1811_v3 = vadd.f32 %v1809_v57, %v1807_v50 }
 0x689   : > { %1831 = vrot.lane.b32.xlu2 %v1811_v3, %s2384_s26 }
 0x68c   : > { %v1361_v7 = vpop.permute.xlu1 %1360 }
 0x68d   : > { %v1366_v46 = vsel %vm872_vm1, %v1361_v7, %v3059_v49 }
 0x68e   : > { %2181 = vst [vmem:[%s2462_s25 + $0x10] sm:$0xff] %v1366_v46 }
 0x694   : > { %v1590_v24 = vpop.permute.xlu1 %1589 }
 0x695   : > { %v1594_v12 = vsel %vm872_vm1, %v1590_v24, %v3105_v58 }
 0x696   : > { %2192 = vst [vmem:[%s2462_s25 + $0x28] sm:$0xff] %v1594_v12 }
 0x69d   : > { %v1830_v26 = vpop.permute.xlu1 %1829 }
 0x69e   : > { %1835 = vst.msk [vmem:[#allocation4 + $0x10] sm:$0xff] %vm872_vm1, %v1830_v26 }
 0x6db   : > { %v1815_v13 = vpop.permute.xlu2 %1814 }
 0x6dc   : > { %v1820_v5 = vsel %vm872_vm1, %v1815_v13, %v1810_v43  ;;  %1825 = vst.msk [vmem:[#allocation4] sm:$0xff] %vm872_vm1, %v1815_v13 }
 0x6dd   : > { %2201 = vst [vmem:[%s2462_s25 + $0x30] sm:$0xff] %v1820_v5 }
 0x6e2   : > { %1840 = sbr.rel (%p2203_p7) target bundleno = 1771 (0x6eb), region = 60 }
 0x6e3   : > { %v1817_v49 = vpop.permute.xlu0 %1816  ;;  %v1832_v6 = vpop.permute.xlu2 %1831 }
 0x6e4   : > { %v1821_v19 = vsel %vm872_vm1, %v1817_v49, %v1811_v3  ;;  %1826 = vst.msk [vmem:[#allocation4 + $0x8] sm:$0xff] %vm872_vm1, %v1817_v49 }
 0x6e5   : > { %2202 = vst [vmem:[%s2462_s25 + $0x38] sm:$0xff] %v1821_v19 }
 0x6e6   : > { %1836 = vst.msk [vmem:[#allocation4 + $0x18] sm:$0xff] %vm872_vm1, %v1832_v6 }
 0x6e7   : > { %1841 = vst.msk [vmem:[%s3245_s9] sm:$0xff] %vm872_vm1, %v1815_v13 }
 0x6e8   : > { %1842 = vst.msk [vmem:[%s3245_s9 + $0x8] sm:$0xff] %vm872_vm1, %v1817_v49 }
 0x6e9   : > { %2204 = vst.msk [vmem:[%s3245_s9 + $0x10] sm:$0xff] %vm872_vm1, %v1830_v26 }
 0x6ea   : > { %2205 = vst.msk [vmem:[%s3245_s9 + $0x18] sm:$0xff] %vm872_vm1, %v1832_v6 }
 0x6eb PF: > { %s20_s30 = sadd.s32 1, %s2381_s30  }
 0x6ec   : > { %p17_p8 = scmp.ge.s32.totalorder %s20_s30, 4  }
 0x6ee   :  { %19 = sbr.rel (!%p17_p8) target bundleno = 1 (0x1), region = 114 }

</bundles_post_ra>
